<compile_context>
chip_gen: v6e
topology: v6e:2x2x1
jax: 0.10.0
libtpu: 0.0.40
codegen_flags: <defaults>
</compile_context>

<pallas_src>
import jax
import jax.numpy as jnp
from jax.experimental import pallas as pl
from jax.experimental.pallas import tpu as pltpu

EPS = 1e-5
NEG_SLOPE = 0.2

# ---- packed small-parameter layout: one (16, 1024) f32 array, one row per vector
P_ROWS, P_COLS = 16, 1024
ROW_B1, ROW_G1, ROW_BE1 = 0, 1, 2          # width 256
ROW_B2, ROW_G2, ROW_BE2 = 3, 4, 5          # width 512
ROW_B3, ROW_G3, ROW_BE3 = 6, 7, 8          # width 1024
ROW_W4, ROW_B4 = 9, 10                     # w4 transposed (1024), b4 scalar (col 0)

DIMS = (192, 256, 512, 1024, 1)


def _bn_lrelu(h, gamma, beta):
    # BatchNorm1d (training mode: batch stats, biased variance) + LeakyReLU(0.2).
    # All math in f32. Variance via E[h^2] - mean^2 (single pass over h).
    mean = jnp.mean(h, axis=0, keepdims=True)
    var = jnp.mean(h * h, axis=0, keepdims=True) - mean * mean
    var = jnp.maximum(var, 0.0)  # guard tiny negative from cancellation
    h = (h - mean) * jax.lax.rsqrt(var + EPS)
    h = h * gamma + beta
    return jnp.where(h >= 0, h, NEG_SLOPE * h)


def mlp_kernel(x_ref, w1_ref, w2_ref, w3_ref, p_ref, o_ref):
    x = x_ref[...]          # bf16; MXU consumes bf16 natively
    p = p_ref[...]          # (16, 1024) f32, 16 vregs, loaded once

    # Layer 1: Linear(192 -> 256) + BN + LeakyReLU  (bf16 matmul, f32 accumulate)
    h = jnp.dot(x, w1_ref[...], preferred_element_type=jnp.float32)
    h = h + p[ROW_B1:ROW_B1 + 1, 0:256]
    h = _bn_lrelu(h, p[ROW_G1:ROW_G1 + 1, 0:256], p[ROW_BE1:ROW_BE1 + 1, 0:256])

    # Layer 2: Linear(256 -> 512) + BN + LeakyReLU
    h = jnp.dot(h.astype(jnp.bfloat16), w2_ref[...],
                preferred_element_type=jnp.float32)
    h = h + p[ROW_B2:ROW_B2 + 1, 0:512]
    h = _bn_lrelu(h, p[ROW_G2:ROW_G2 + 1, 0:512], p[ROW_BE2:ROW_BE2 + 1, 0:512])

    # Layer 3: Linear(512 -> 1024) + BN + LeakyReLU
    h = jnp.dot(h.astype(jnp.bfloat16), w3_ref[...],
                preferred_element_type=jnp.float32)
    h = h + p[ROW_B3:ROW_B3 + 1, :]
    h = _bn_lrelu(h, p[ROW_G3:ROW_G3 + 1, :], p[ROW_BE3:ROW_BE3 + 1, :])

    # Layer 4: Linear(1024 -> 1) as VPU multiply + cross-lane reduce (XLU).
    w4 = p[ROW_W4:ROW_W4 + 1, :]           # (1, 1024)
    b4 = p[ROW_B4:ROW_B4 + 1, 0:1]         # (1, 1)
    out = jnp.sum(h * w4, axis=-1, keepdims=True) + b4
    o_ref[...] = out.astype(o_ref.dtype)


def mlp_forward(x_bf16, w1_bf16, w2_bf16, w3_bf16, packed_f32):
    """x_bf16: [B, 192] bf16 -> [B, 1] f32. All params already prepared (no per-call casts)."""
    B = x_bf16.shape[0]
    args = (x_bf16, w1_bf16, w2_bf16, w3_bf16, packed_f32)

    full = lambda a: pl.BlockSpec(a.shape, lambda: (0,) * a.ndim)

    flops = 2 * B * (DIMS[0] * DIMS[1] + DIMS[1] * DIMS[2]
                     + DIMS[2] * DIMS[3] + DIMS[3] * DIMS[4])
    bytes_accessed = sum(int(a.size) * a.dtype.itemsize for a in args) + B * 4

    return pl.pallas_call(
        mlp_kernel,
        out_shape=jax.ShapeDtypeStruct((B, 1), jnp.float32),
        grid_spec=pltpu.PrefetchScalarGridSpec(
            num_scalar_prefetch=0,
            grid=(),
            in_specs=[full(a) for a in args],
            out_specs=pl.BlockSpec((B, 1), lambda: (0, 0)),
        ),
        cost_estimate=pl.CostEstimate(flops=flops, transcendentals=0,
                                      bytes_accessed=bytes_accessed),
        # Total operands ~1.5 MB: far below the default scoped VMEM limit on
        # v5e / v6e / v7x, so no vmem_limit override is needed.
    )(*args)


def init_params(key, dims=DIMS):
    """Deterministic synthetic f32 master parameters.

    Layers 1-3: weights (in, out), bias (out,), BN gamma/beta (out,).
    Layer 4   : weight stored transposed as (1024,), bias (1,).
    """
    params = []
    keys = jax.random.split(key, 16)
    ki = 0
    for li in range(4):
        fin, fout = dims[li], dims[li + 1]
        if li < 3:
            w = jax.random.normal(keys[ki], (fin, fout), jnp.float32) * 0.02
        else:
            w = jax.random.normal(keys[ki], (fin,), jnp.float32) * 0.02  # transposed row
        ki += 1
        b = jax.random.normal(keys[ki], (max(fout, 1),), jnp.float32) * 0.01
        ki += 1
        params.append(w)
        params.append(b)
        if li < 3:  # BN after first three Linears only
            g = 1.0 + jax.random.normal(keys[ki], (fout,), jnp.float32) * 0.01
            ki += 1
            be = jax.random.normal(keys[ki], (fout,), jnp.float32) * 0.01
            ki += 1
            params.append(g)
            params.append(be)
    return params


def prepare_params(params_f32):
    """One-time (per model) preparation: bf16 weight casts + small-vector packing."""
    (w1, b1, g1, be1, w2, b2, g2, be2, w3, b3, g3, be3, w4, b4) = params_f32

    packed = jnp.zeros((P_ROWS, P_COLS), jnp.float32)

    def put(p, row, vec):
        vec = jnp.reshape(vec, (-1,))
        return p.at[row, : vec.shape[0]].set(vec)

    packed = put(packed, ROW_B1, b1)
    packed = put(packed, ROW_G1, g1)
    packed = put(packed, ROW_BE1, be1)
    packed = put(packed, ROW_B2, b2)
    packed = put(packed, ROW_G2, g2)
    packed = put(packed, ROW_BE2, be2)
    packed = put(packed, ROW_B3, b3)
    packed = put(packed, ROW_G3, g3)
    packed = put(packed, ROW_BE3, be3)
    packed = put(packed, ROW_W4, w4)
    packed = put(packed, ROW_B4, b4)

    return (w1.astype(jnp.bfloat16),
            w2.astype(jnp.bfloat16),
            w3.astype(jnp.bfloat16),
            packed)


def mlp_reference(x, params_f32):
    """Pure-JAX reference mirroring the kernel math (bf16 matmuls, f32 BN)."""
    (w1, b1, g1, be1, w2, b2, g2, be2, w3, b3, g3, be3, w4, b4) = params_f32

    def bn_lrelu(h, g, be):
        m = jnp.mean(h, axis=0, keepdims=True)
        v = jnp.maximum(jnp.mean(h * h, axis=0, keepdims=True) - m * m, 0.0)
        h = (h - m) * jax.lax.rsqrt(v + EPS) * g[None, :] + be[None, :]
        return jnp.where(h >= 0, h, NEG_SLOPE * h)

    bdot = lambda a, w: jnp.dot(a.astype(jnp.bfloat16), w.astype(jnp.bfloat16),
                                preferred_element_type=jnp.float32)

    h = bn_lrelu(bdot(x, w1) + b1[None, :], g1, be1)
    h = bn_lrelu(bdot(h, w2) + b2[None, :], g2, be2)
    h = bn_lrelu(bdot(h, w3) + b3[None, :], g3, be3)
    return jnp.sum(h * w4[None, :], axis=-1, keepdims=True) + b4[None, :]


if __name__ == "__main__":
    key = jax.random.PRNGKey(0)
    kx, kp = jax.random.split(key)

    B, INPUT_NC = 8, 192  # batch >= 2 required for BatchNorm1d training-mode stats
    x = jax.random.normal(kx, (B, INPUT_NC), jnp.float32)
    params = init_params(kp)

    # One-time preparation (outside the per-call path): bf16 weights + packed smalls.
    w1b, w2b, w3b, packed = prepare_params(params)
    x_bf16 = x.astype(jnp.bfloat16)

    fwd = jax.jit(mlp_forward)
    out = fwd(x_bf16, w1b, w2b, w3b, packed)
    out = jax.block_until_ready(out)

    ref = mlp_reference(x, params)
    assert out.shape == (B, 1), out.shape
    assert jnp.allclose(out, ref, atol=2e-3, rtol=2e-3), (
        "mismatch vs reference: max abs err = "
        + str(float(jnp.max(jnp.abs(out - ref))))
    )
    print("KERNEL_OK")
</pallas_src>

<mosaic_0001>
module attributes {stable_mosaic.version = 11 : i64} {
  func.func @mlp_kernel(%arg0: memref<8x192xbf16, #tpu.memory_space<vmem>>, %arg1: memref<192x256xbf16, #tpu.memory_space<vmem>>, %arg2: memref<256x512xbf16, #tpu.memory_space<vmem>>, %arg3: memref<512x1024xbf16, #tpu.memory_space<vmem>>, %arg4: memref<16x1024xf32, #tpu.memory_space<vmem>>, %arg5: memref<8x1xf32, #tpu.memory_space<vmem>>) attributes {dimension_semantics = [], scalar_prefetch = 0 : i64, scratch_operands = 0 : i64, tpu.core_type = #tpu.core_type<tc>} {
    %c0 = arith.constant 0 : index
    %c0_0 = arith.constant 0 : index
    %0 = vector.load %arg0[%c0, %c0_0] : memref<8x192xbf16, #tpu.memory_space<vmem>>, vector<8x192xbf16>
    %c0_1 = arith.constant 0 : index
    %c0_2 = arith.constant 0 : index
    %1 = vector.load %arg4[%c0_1, %c0_2] : memref<16x1024xf32, #tpu.memory_space<vmem>>, vector<16x1024xf32>
    %c0_3 = arith.constant 0 : index
    %c0_4 = arith.constant 0 : index
    %2 = vector.load %arg1[%c0_3, %c0_4] : memref<192x256xbf16, #tpu.memory_space<vmem>>, vector<192x256xbf16>
    %cst = arith.constant dense<0.000000e+00> : vector<8x256xf32>
    %3 = tpu.matmul %0, %2, %cst {dimension_numbers = #tpu.dot_dimension_numbers<[1], [0], [0], [1], [0, 0, 1, 1], [], []>} : vector<8x192xbf16>, vector<192x256xbf16>, vector<8x256xf32> -> vector<8x256xf32>
    %4 = vector.extract_strided_slice %1 {offsets = [0, 0], sizes = [1, 256], strides = [1, 1]} : vector<16x1024xf32> to vector<1x256xf32>
    %5 = vector.broadcast %4 : vector<1x256xf32> to vector<8x256xf32>
    %6 = arith.addf %3, %5 : vector<8x256xf32>
    %7 = vector.extract_strided_slice %1 {offsets = [1, 0], sizes = [1, 256], strides = [1, 1]} : vector<16x1024xf32> to vector<1x256xf32>
    %8 = vector.extract_strided_slice %1 {offsets = [2, 0], sizes = [1, 256], strides = [1, 1]} : vector<16x1024xf32> to vector<1x256xf32>
    %cst_5 = arith.constant dense<0.000000e+00> : vector<256xf32>
    %9 = vector.multi_reduction <add>, %6, %cst_5 [0] : vector<8x256xf32> to vector<256xf32>
    %10 = vector.shape_cast %9 : vector<256xf32> to vector<1x256xf32>
    %cst_6 = arith.constant 8.000000e+00 : f32
    %11 = vector.broadcast %cst_6 : f32 to vector<1x256xf32>
    %12 = arith.divf %10, %11 : vector<1x256xf32>
    %13 = arith.mulf %6, %6 : vector<8x256xf32>
    %cst_7 = arith.constant dense<0.000000e+00> : vector<256xf32>
    %14 = vector.multi_reduction <add>, %13, %cst_7 [0] : vector<8x256xf32> to vector<256xf32>
    %15 = vector.shape_cast %14 : vector<256xf32> to vector<1x256xf32>
    %cst_8 = arith.constant 8.000000e+00 : f32
    %16 = vector.broadcast %cst_8 : f32 to vector<1x256xf32>
    %17 = arith.divf %15, %16 : vector<1x256xf32>
    %18 = arith.mulf %12, %12 : vector<1x256xf32>
    %19 = arith.subf %17, %18 : vector<1x256xf32>
    %cst_9 = arith.constant 0.000000e+00 : f32
    %20 = vector.broadcast %cst_9 : f32 to vector<1x256xf32>
    %21 = arith.maximumf %19, %20 : vector<1x256xf32>
    %22 = vector.broadcast %12 : vector<1x256xf32> to vector<8x256xf32>
    %23 = arith.subf %6, %22 : vector<8x256xf32>
    %cst_10 = arith.constant 9.99999974E-6 : f32
    %24 = vector.broadcast %cst_10 : f32 to vector<1x256xf32>
    %25 = arith.addf %21, %24 : vector<1x256xf32>
    %26 = math.rsqrt %25 : vector<1x256xf32>
    %27 = vector.broadcast %26 : vector<1x256xf32> to vector<8x256xf32>
    %28 = arith.mulf %23, %27 : vector<8x256xf32>
    %29 = vector.broadcast %7 : vector<1x256xf32> to vector<8x256xf32>
    %30 = arith.mulf %28, %29 : vector<8x256xf32>
    %31 = vector.broadcast %8 : vector<1x256xf32> to vector<8x256xf32>
    %32 = arith.addf %30, %31 : vector<8x256xf32>
    %cst_11 = arith.constant 0.000000e+00 : f32
    %33 = vector.broadcast %cst_11 : f32 to vector<8x256xf32>
    %34 = arith.cmpf oge, %32, %33 : vector<8x256xf32>
    %cst_12 = arith.constant 2.000000e-01 : f32
    %35 = vector.broadcast %cst_12 : f32 to vector<8x256xf32>
    %36 = arith.mulf %35, %32 : vector<8x256xf32>
    %37 = arith.select %34, %32, %36 : vector<8x256xi1>, vector<8x256xf32>
    %38 = arith.truncf %37 : vector<8x256xf32> to vector<8x256xbf16>
    %c0_13 = arith.constant 0 : index
    %c0_14 = arith.constant 0 : index
    %39 = vector.load %arg2[%c0_13, %c0_14] : memref<256x512xbf16, #tpu.memory_space<vmem>>, vector<256x512xbf16>
    %cst_15 = arith.constant dense<0.000000e+00> : vector<8x512xf32>
    %40 = tpu.matmul %38, %39, %cst_15 {dimension_numbers = #tpu.dot_dimension_numbers<[1], [0], [0], [1], [0, 0, 1, 1], [], []>} : vector<8x256xbf16>, vector<256x512xbf16>, vector<8x512xf32> -> vector<8x512xf32>
    %41 = vector.extract_strided_slice %1 {offsets = [3, 0], sizes = [1, 512], strides = [1, 1]} : vector<16x1024xf32> to vector<1x512xf32>
    %42 = vector.broadcast %41 : vector<1x512xf32> to vector<8x512xf32>
    %43 = arith.addf %40, %42 : vector<8x512xf32>
    %44 = vector.extract_strided_slice %1 {offsets = [4, 0], sizes = [1, 512], strides = [1, 1]} : vector<16x1024xf32> to vector<1x512xf32>
    %45 = vector.extract_strided_slice %1 {offsets = [5, 0], sizes = [1, 512], strides = [1, 1]} : vector<16x1024xf32> to vector<1x512xf32>
    %cst_16 = arith.constant dense<0.000000e+00> : vector<512xf32>
    %46 = vector.multi_reduction <add>, %43, %cst_16 [0] : vector<8x512xf32> to vector<512xf32>
    %47 = vector.shape_cast %46 : vector<512xf32> to vector<1x512xf32>
    %cst_17 = arith.constant 8.000000e+00 : f32
    %48 = vector.broadcast %cst_17 : f32 to vector<1x512xf32>
    %49 = arith.divf %47, %48 : vector<1x512xf32>
    %50 = arith.mulf %43, %43 : vector<8x512xf32>
    %cst_18 = arith.constant dense<0.000000e+00> : vector<512xf32>
    %51 = vector.multi_reduction <add>, %50, %cst_18 [0] : vector<8x512xf32> to vector<512xf32>
    %52 = vector.shape_cast %51 : vector<512xf32> to vector<1x512xf32>
    %cst_19 = arith.constant 8.000000e+00 : f32
    %53 = vector.broadcast %cst_19 : f32 to vector<1x512xf32>
    %54 = arith.divf %52, %53 : vector<1x512xf32>
    %55 = arith.mulf %49, %49 : vector<1x512xf32>
    %56 = arith.subf %54, %55 : vector<1x512xf32>
    %cst_20 = arith.constant 0.000000e+00 : f32
    %57 = vector.broadcast %cst_20 : f32 to vector<1x512xf32>
    %58 = arith.maximumf %56, %57 : vector<1x512xf32>
    %59 = vector.broadcast %49 : vector<1x512xf32> to vector<8x512xf32>
    %60 = arith.subf %43, %59 : vector<8x512xf32>
    %cst_21 = arith.constant 9.99999974E-6 : f32
    %61 = vector.broadcast %cst_21 : f32 to vector<1x512xf32>
    %62 = arith.addf %58, %61 : vector<1x512xf32>
    %63 = math.rsqrt %62 : vector<1x512xf32>
    %64 = vector.broadcast %63 : vector<1x512xf32> to vector<8x512xf32>
    %65 = arith.mulf %60, %64 : vector<8x512xf32>
    %66 = vector.broadcast %44 : vector<1x512xf32> to vector<8x512xf32>
    %67 = arith.mulf %65, %66 : vector<8x512xf32>
    %68 = vector.broadcast %45 : vector<1x512xf32> to vector<8x512xf32>
    %69 = arith.addf %67, %68 : vector<8x512xf32>
    %cst_22 = arith.constant 0.000000e+00 : f32
    %70 = vector.broadcast %cst_22 : f32 to vector<8x512xf32>
    %71 = arith.cmpf oge, %69, %70 : vector<8x512xf32>
    %cst_23 = arith.constant 2.000000e-01 : f32
    %72 = vector.broadcast %cst_23 : f32 to vector<8x512xf32>
    %73 = arith.mulf %72, %69 : vector<8x512xf32>
    %74 = arith.select %71, %69, %73 : vector<8x512xi1>, vector<8x512xf32>
    %75 = arith.truncf %74 : vector<8x512xf32> to vector<8x512xbf16>
    %c0_24 = arith.constant 0 : index
    %c0_25 = arith.constant 0 : index
    %76 = vector.load %arg3[%c0_24, %c0_25] : memref<512x1024xbf16, #tpu.memory_space<vmem>>, vector<512x1024xbf16>
    %cst_26 = arith.constant dense<0.000000e+00> : vector<8x1024xf32>
    %77 = tpu.matmul %75, %76, %cst_26 {dimension_numbers = #tpu.dot_dimension_numbers<[1], [0], [0], [1], [0, 0, 1, 1], [], []>} : vector<8x512xbf16>, vector<512x1024xbf16>, vector<8x1024xf32> -> vector<8x1024xf32>
    %78 = vector.extract_strided_slice %1 {offsets = [6, 0], sizes = [1, 1024], strides = [1, 1]} : vector<16x1024xf32> to vector<1x1024xf32>
    %79 = vector.broadcast %78 : vector<1x1024xf32> to vector<8x1024xf32>
    %80 = arith.addf %77, %79 : vector<8x1024xf32>
    %81 = vector.extract_strided_slice %1 {offsets = [7, 0], sizes = [1, 1024], strides = [1, 1]} : vector<16x1024xf32> to vector<1x1024xf32>
    %82 = vector.extract_strided_slice %1 {offsets = [8, 0], sizes = [1, 1024], strides = [1, 1]} : vector<16x1024xf32> to vector<1x1024xf32>
    %cst_27 = arith.constant dense<0.000000e+00> : vector<1024xf32>
    %83 = vector.multi_reduction <add>, %80, %cst_27 [0] : vector<8x1024xf32> to vector<1024xf32>
    %84 = vector.shape_cast %83 : vector<1024xf32> to vector<1x1024xf32>
    %cst_28 = arith.constant 8.000000e+00 : f32
    %85 = vector.broadcast %cst_28 : f32 to vector<1x1024xf32>
    %86 = arith.divf %84, %85 : vector<1x1024xf32>
    %87 = arith.mulf %80, %80 : vector<8x1024xf32>
    %cst_29 = arith.constant dense<0.000000e+00> : vector<1024xf32>
    %88 = vector.multi_reduction <add>, %87, %cst_29 [0] : vector<8x1024xf32> to vector<1024xf32>
    %89 = vector.shape_cast %88 : vector<1024xf32> to vector<1x1024xf32>
    %cst_30 = arith.constant 8.000000e+00 : f32
    %90 = vector.broadcast %cst_30 : f32 to vector<1x1024xf32>
    %91 = arith.divf %89, %90 : vector<1x1024xf32>
    %92 = arith.mulf %86, %86 : vector<1x1024xf32>
    %93 = arith.subf %91, %92 : vector<1x1024xf32>
    %cst_31 = arith.constant 0.000000e+00 : f32
    %94 = vector.broadcast %cst_31 : f32 to vector<1x1024xf32>
    %95 = arith.maximumf %93, %94 : vector<1x1024xf32>
    %96 = vector.broadcast %86 : vector<1x1024xf32> to vector<8x1024xf32>
    %97 = arith.subf %80, %96 : vector<8x1024xf32>
    %cst_32 = arith.constant 9.99999974E-6 : f32
    %98 = vector.broadcast %cst_32 : f32 to vector<1x1024xf32>
    %99 = arith.addf %95, %98 : vector<1x1024xf32>
    %100 = math.rsqrt %99 : vector<1x1024xf32>
    %101 = vector.broadcast %100 : vector<1x1024xf32> to vector<8x1024xf32>
    %102 = arith.mulf %97, %101 : vector<8x1024xf32>
    %103 = vector.broadcast %81 : vector<1x1024xf32> to vector<8x1024xf32>
    %104 = arith.mulf %102, %103 : vector<8x1024xf32>
    %105 = vector.broadcast %82 : vector<1x1024xf32> to vector<8x1024xf32>
    %106 = arith.addf %104, %105 : vector<8x1024xf32>
    %cst_33 = arith.constant 0.000000e+00 : f32
    %107 = vector.broadcast %cst_33 : f32 to vector<8x1024xf32>
    %108 = arith.cmpf oge, %106, %107 : vector<8x1024xf32>
    %cst_34 = arith.constant 2.000000e-01 : f32
    %109 = vector.broadcast %cst_34 : f32 to vector<8x1024xf32>
    %110 = arith.mulf %109, %106 : vector<8x1024xf32>
    %111 = arith.select %108, %106, %110 : vector<8x1024xi1>, vector<8x1024xf32>
    %112 = vector.extract_strided_slice %1 {offsets = [9, 0], sizes = [1, 1024], strides = [1, 1]} : vector<16x1024xf32> to vector<1x1024xf32>
    %113 = vector.extract_strided_slice %1 {offsets = [10, 0], sizes = [1, 1], strides = [1, 1]} : vector<16x1024xf32> to vector<1x1xf32>
    %114 = vector.broadcast %112 : vector<1x1024xf32> to vector<8x1024xf32>
    %115 = arith.mulf %111, %114 : vector<8x1024xf32>
    %cst_35 = arith.constant dense<0.000000e+00> : vector<8xf32>
    %116 = vector.multi_reduction <add>, %115, %cst_35 [1] : vector<8x1024xf32> to vector<8xf32>
    %117 = vector.shape_cast %116 : vector<8xf32> to vector<8x1xf32>
    %118 = vector.broadcast %113 : vector<1x1xf32> to vector<8x1xf32>
    %119 = arith.addf %117, %118 : vector<8x1xf32>
    %c0_36 = arith.constant 0 : index
    %c0_37 = arith.constant 0 : index
    %120 = vector.load %arg5[%c0_36, %c0_37] : memref<8x1xf32, #tpu.memory_space<vmem>>, vector<8x1xf32>
    tpu.vector_store %arg5[%c0_36, %c0_37], %119 {strides = array<i32>} : memref<8x1xf32, #tpu.memory_space<vmem>>, vector<8x1xf32>,
    return
  }
}

</mosaic_0001>

<bundles_post_ra>
// kernel: mlp_forward.1
= control target key start
LH: loop header
LB: loop body
LE: loop exit
PB: predicated region body
PF: predicated region fallthrough
CT: control target
= control target key end

     0   :  { %10 = vsyncpa [#allocation3], 0  ;;  %s4200_s0 = inlined_call_operand.hbm [shape: bf16[8,192], index: 0, kind: input, shape index: {}]   ;;  %s4201_s1 = inlined_call_operand.hbm [shape: bf16[192,256], index: 1, kind: input, shape index: {}]   ;;  %s4202_s2 = inlined_call_operand.hbm [shape: bf16[256,512], index: 2, kind: input, shape index: {}]   ;;  %s4203_s3 = inlined_call_operand.hbm [shape: bf16[512,1024], index: 3, kind: input, shape index: {}]   ;;  %s4204_s4 = inlined_call_operand.hbm [shape: f32[16,1024], index: 4, kind: input, shape index: {}]   ;;  %s4205_s5 = inlined_call_operand.vmem [shape: f32[8,1], index: 5, kind: output, shape index: {}]  }
   0x1   :  { %11 = vsyncpa [#allocation5], 0 }
   0x2   :  { %12 = vsyncpa [#allocation8], 0  ;;  %s3877_s18 = smov [#allocation4]  }
   0x3   :  { %s28_s19 = sshll.u32 %s3877_s18, 4  ;;  %s29_s19 = int_to_ptr.vmem [resolvable:$true] %s28_s19 }
   0x4   :  { %s3779_s20 = scalar_lea.vmem %s29_s19, 3072  ;;  %p3784_p1 = scmp.lt.s32.totalorder %s29_s19, %s29_s19 }
   0x5   :  { %p3780_p0 = scmp.ne.s32.totalorder %s29_s19, %s3779_s20  ;;  %p3785_p2 = scmp.lt.s32.totalorder %s3779_s20, %s3779_s20 }
   0x7   :  { %p3786_p3 = por %p3785_p2, %p3784_p1 }
   0x9   :  { %p3787_p4 = pnand %p3786_p3, %p3780_p0 }
   0xb   :  { %3790 = shalt.err (!%p3787_p4)
}
   0xc   :  { %s3878_s21 = smov 128   ;;  %s3879_s22 = smov 8  }
   0xd   :  { %34 = dma.hbm_to_vmem [thread:$0]  %s4201_s1, 3072, %s29_s19, [#allocation5], %s3878_s21, %s3878_s21, %s3879_s22  }
   0xe   :  { %s3880_s25 = smov [#allocation7]  }
   0xf   :  { %s52_s26 = sshll.u32 %s3880_s25, 4  ;;  %s53_s26 = int_to_ptr.vmem [resolvable:$true] %s52_s26 }
  0x10   :  { %s3799_s27 = scalar_lea.vmem %s53_s26, 32768  ;;  %p3804_p6 = scmp.lt.s32.totalorder %s53_s26, %s53_s26 }
  0x11   :  { %p3800_p5 = scmp.ne.s32.totalorder %s53_s26, %s3799_s27  ;;  %p3805_p7 = scmp.lt.s32.totalorder %s3799_s27, %s3799_s27 }
  0x13   :  { %p3806_p8 = por %p3805_p7, %p3804_p6 }
  0x15   :  { %p3807_p9 = pnand %p3806_p8, %p3800_p5 }
  0x17   :  { %3810 = shalt.err (!%p3807_p9)
}
  0x18   :  { %s3881_s28 = smov 512   ;;  %s3882_s29 = smov 32  }
  0x19   :  { %58 = dma.hbm_to_vmem [thread:$0]  %s4203_s3, 32768, %s53_s26, [#allocation8], %s3881_s28, %s3881_s28, %s3882_s29  }
  0x1a   :  { %s3883_s7 = smov [#allocation2]   ;;  %s3884_s9 = smov [#allocation6]  }
  0x1b   :  { %s19_s8 = sshll.u32 %s3883_s7, 4  ;;  %s40_s1 = sshll.u32 %s3884_s9, 4  ;;  %s20_s8 = int_to_ptr.vmem [resolvable:$true] %s19_s8  ;;  %s41_s1 = int_to_ptr.vmem [resolvable:$true] %s40_s1 }
  0x1c   :  { %s3819_s10 = scalar_lea.vmem %s20_s8, 128  ;;  %p3824_p11 = scmp.lt.s32.totalorder %s20_s8, %s20_s8 }
  0x1d   :  { %p3820_p10 = scmp.ne.s32.totalorder %s20_s8, %s3819_s10  ;;  %p3825_p12 = scmp.lt.s32.totalorder %s3819_s10, %s3819_s10 }
  0x1f   :  { %p3826_p13 = por %p3825_p12, %p3824_p11 }
  0x21   :  { %p3827_p0 = pnand %p3826_p13, %p3820_p10 }
  0x23   :  { %3830 = shalt.err (!%p3827_p0)
}
  0x24   :  { %22 = dma.hbm_to_vmem [thread:$0]  %s4200_s0, 128, %s20_s8, [#allocation3]  }
  0x25   :  { %s3839_s13 = scalar_lea.vmem %s41_s1, 8192  ;;  %p3844_p2 = scmp.lt.s32.totalorder %s41_s1, %s41_s1 }
  0x26   :  { %p3840_p1 = scmp.ne.s32.totalorder %s41_s1, %s3839_s13  ;;  %p3845_p3 = scmp.lt.s32.totalorder %s3839_s13, %s3839_s13 }
  0x28   :  { %p3846_p4 = por %p3845_p3, %p3844_p2 }
  0x2a   :  { %p3847_p5 = pnand %p3846_p4, %p3840_p1 }
  0x2c   :  { %3850 = shalt.err (!%p3847_p5)
}
  0x2d   :  { %s3885_s3 = smov 256   ;;  %s3886_s14 = smov 16  }
  0x2e   :  { %46 = dma.hbm_to_vmem [thread:$0]  %s4202_s2, 8192, %s41_s1, [#allocation5], %s3885_s3, %s3885_s3, %s3886_s14  }
  0x2f   :  { %s3887_s17 = smov [#allocation9]  }
  0x30   :  { %s64_s18 = sshll.u32 %s3887_s17, 4  ;;  %s65_s18 = int_to_ptr.vmem [resolvable:$true] %s64_s18 }
  0x31   :  { %s3859_s19 = scalar_lea.vmem %s65_s18, 2048  ;;  %p3864_p7 = scmp.lt.s32.totalorder %s65_s18, %s65_s18 }
  0x32   :  { %p3860_p6 = scmp.ne.s32.totalorder %s65_s18, %s3859_s19  ;;  %p3865_p8 = scmp.lt.s32.totalorder %s3859_s19, %s3859_s19 }
  0x34   :  { %p3866_p9 = por %p3865_p8, %p3864_p7 }
  0x36   :  { %p3867_p10 = pnand %p3866_p9, %p3860_p6 }
  0x38   :  { %3870 = shalt.err (!%p3867_p10)
}
  0x39   :  { %s3888_s0 = smov 1024   ;;  %s3889_s20 = smov 64  }
  0x3a   :  { %70 = dma.hbm_to_vmem [thread:$0]  %s4204_s4, 2048, %s65_s18, [#allocation8], %s3888_s0, %s3888_s0, %s3889_s20  }
  0x3b   :  { %3871 = dma.done.wait [#allocation3], 128  }
  0x3c   :  { %3872 = vsyncadd [#allocation3], 4294967168 }
  0x3d   :  { %3873 = dma.done.wait [#allocation5], 11264  }
  0x3e   :  { %3874 = vsyncadd [#allocation5], 4294956032 }
  0x3f   :  { %3875 = dma.done.wait [#allocation8], 34816  }
  0x40   :  { %3876 = vsyncadd [#allocation8], 4294932480  ;;  %v3605_v0 = vld [vmem:[#allocation4 + $0x74] ss:$8 sps:$4 sm:$0xff]   ;;  %v3607_v1 = vld [vmem:[#allocation4 + $0x70] ss:$8 sps:$4 sm:$0xff]  }
  0x41   :  { %266 = vmatprep.subr.bf16.mxu0 %v3605_v0  ;;  %v3608_v2 = vld [vmem:[#allocation4 + $0x64] ss:$8 sps:$4 sm:$0xff]   ;;  %v3610_v3 = vld [vmem:[#allocation4 + $0x60] ss:$8 sps:$4 sm:$0xff]   ;;  %v3611_v4 = vld [vmem:[#allocation4 + $0x54] ss:$8 sps:$4 sm:$0xff]  }
  0x42   :  { %267 = vmatpush1.bf16.msra.mxu0 %v3607_v1  ;;  %v3613_v5 = vld [vmem:[#allocation4 + $0x50] ss:$8 sps:$4 sm:$0xff]   ;;  %v3614_v6 = vld [vmem:[#allocation4 + $0x44] ss:$8 sps:$4 sm:$0xff]   ;;  %v3616_v7 = vld [vmem:[#allocation4 + $0x40] ss:$8 sps:$4 sm:$0xff]  }
  0x43   :  { %268 = vmatprep.subr.bf16.mxu0 %v3608_v2  ;;  %v3617_v8 = vld [vmem:[#allocation4 + $0x34] ss:$8 sps:$4 sm:$0xff]   ;;  %v3619_v9 = vld [vmem:[#allocation4 + $0x30] ss:$8 sps:$4 sm:$0xff]   ;;  %v3620_v10 = vld [vmem:[#allocation4 + $0x24] ss:$8 sps:$4 sm:$0xff]  }
  0x44   :  { %v87_v11 = vld [vmem:[#allocation2] sm:$0xff]  ;;  %vm262_vm0 = vcmask 523264   ;;  %v3643_v13 = vld [vmem:[#allocation6 + $0xe4] ss:$16 sps:$4 sm:$0xff]   ;;  %v3622_v14 = vld [vmem:[#allocation4 + $0x20] ss:$8 sps:$4 sm:$0xff]  }
  0x45   :  { %v3246_v12 = vcombine.high %v87_v11, %v87_v11  ;;  %v3648_v15 = vld [vmem:[#allocation6 + $0xe0] ss:$16 sps:$4 sm:$0xff]   ;;  %v3649_v16 = vld [vmem:[#allocation6 + $0xc4] ss:$16 sps:$4 sm:$0xff]   ;;  %780 = vmatprep.subr.bf16.mxu1 %v3643_v13  ;;  %v3647_v32 = vld [vmem:[#allocation6 + $0xec] ss:$16 sps:$4 sm:$0xff]   ;;  %v3245_v33 = vcombine.low %v87_v11, %v87_v11 }
  0x46   :  { %269 = vmatpush1.bf16.msra.mxu0 %v3610_v3  ;;  %v3623_v17 = vld [vmem:[#allocation4 + $0x14] ss:$8 sps:$4 sm:$0xff]   ;;  %781 = vmatpush1.bf16.msra.mxu1 %v3648_v15  ;;  %v3654_v18 = vld [vmem:[#allocation6 + $0xc0] ss:$16 sps:$4 sm:$0xff]   ;;  %v3626_v21 = vld [vmem:[#allocation4 + $0x4] ss:$8 sps:$4 sm:$0xff]  }
  0x47   :  { %270 = vmatprep.subr.bf16.mxu0 %v3611_v4  ;;  %3271 = vmatprep.mubr.msk.bf16.mxu0 %vm262_vm0, %v3246_v12  ;;  %v3655_v19 = vld [vmem:[#allocation6 + $0xa4] ss:$16 sps:$4 sm:$0xff]   ;;  %v3625_v20 = vld [vmem:[#allocation4 + $0x10] ss:$8 sps:$4 sm:$0xff]   ;;  %v3628_v23 = vld [vmem:[#allocation4] ss:$8 sps:$4 sm:$0xff]  }
  0x48   :  { %782 = vmatprep.subr.bf16.mxu1 %v3649_v16  ;;  %v3660_v22 = vld [vmem:[#allocation6 + $0xa0] ss:$16 sps:$4 sm:$0xff]   ;;  %v3629_v24 = vld [vmem:[#allocation4 + $0xb4] ss:$8 sps:$4 sm:$0xff]   ;;  %v3632_v26 = vld [vmem:[#allocation4 + $0xa4] ss:$8 sps:$4 sm:$0xff]  }
  0x49   :  { %v3631_v25 = vld [vmem:[#allocation4 + $0xb0] ss:$8 sps:$4 sm:$0xff]   ;;  %v3634_v27 = vld [vmem:[#allocation4 + $0xa0] ss:$8 sps:$4 sm:$0xff]   ;;  %v3635_v28 = vld [vmem:[#allocation4 + $0x94] ss:$8 sps:$4 sm:$0xff]  }
  0x4a   :  { %271 = vmatpush1.bf16.msra.mxu0 %v3613_v5  ;;  %783 = vmatpush1.bf16.msra.mxu1 %v3654_v18  ;;  %v3637_v29 = vld [vmem:[#allocation4 + $0x90] ss:$8 sps:$4 sm:$0xff]   ;;  %v3638_v30 = vld [vmem:[#allocation4 + $0x84] ss:$8 sps:$4 sm:$0xff]   ;;  %v3640_v31 = vld [vmem:[#allocation4 + $0x80] ss:$8 sps:$4 sm:$0xff]  }
  0x4b   :  { %272 = vmatprep.subr.bf16.mxu0 %v3614_v6  ;;  %784 = vmatprep.subr.bf16.mxu1 %v3655_v19  ;;  %v3645_v34 = vld [vmem:[#allocation6 + $0xe8] ss:$16 sps:$4 sm:$0xff]   ;;  %v3653_v35 = vld [vmem:[#allocation6 + $0xcc] ss:$16 sps:$4 sm:$0xff]   ;;  %v3661_v39 = vld [vmem:[#allocation6 + $0x84] ss:$16 sps:$4 sm:$0xff]  }
  0x4c   :  { %v3651_v36 = vld [vmem:[#allocation6 + $0xc8] ss:$16 sps:$4 sm:$0xff]   ;;  %v3659_v37 = vld [vmem:[#allocation6 + $0xac] ss:$16 sps:$4 sm:$0xff]   ;;  %v3666_v42 = vld [vmem:[#allocation6 + $0x80] ss:$16 sps:$4 sm:$0xff]  }
  0x4d   :  { %v3657_v38 = vld [vmem:[#allocation6 + $0xa8] ss:$16 sps:$4 sm:$0xff]   ;;  %v3665_v40 = vld [vmem:[#allocation6 + $0x8c] ss:$16 sps:$4 sm:$0xff]   ;;  %v3667_v43 = vld [vmem:[#allocation6 + $0x64] ss:$16 sps:$4 sm:$0xff]  }
  0x4e   :  { %273 = vmatpush1.bf16.msra.mxu0 %v3616_v7  ;;  %785 = vmatpush1.bf16.msra.mxu1 %v3660_v22  ;;  %v3663_v41 = vld [vmem:[#allocation6 + $0x88] ss:$16 sps:$4 sm:$0xff]   ;;  %v3671_v44 = vld [vmem:[#allocation6 + $0x6c] ss:$16 sps:$4 sm:$0xff]   ;;  %v3672_v46 = vld [vmem:[#allocation6 + $0x60] ss:$16 sps:$4 sm:$0xff]  }
  0x4f   :  { %274 = vmatprep.subr.bf16.mxu0 %v3617_v8  ;;  %786 = vmatprep.subr.bf16.mxu1 %v3661_v39  ;;  %v3669_v45 = vld [vmem:[#allocation6 + $0x68] ss:$16 sps:$4 sm:$0xff]   ;;  %v3673_v47 = vld [vmem:[#allocation6 + $0x44] ss:$16 sps:$4 sm:$0xff]   ;;  %v3677_v48 = vld [vmem:[#allocation6 + $0x4c] ss:$16 sps:$4 sm:$0xff]  }
  0x50   :  { %v3675_v49 = vld [vmem:[#allocation6 + $0x48] ss:$16 sps:$4 sm:$0xff]   ;;  %v3678_v50 = vld [vmem:[#allocation6 + $0x40] ss:$16 sps:$4 sm:$0xff]   ;;  %v3679_v51 = vld [vmem:[#allocation6 + $0x24] ss:$16 sps:$4 sm:$0xff]  }
  0x51   :  { %v3683_v52 = vld [vmem:[#allocation6 + $0x2c] ss:$16 sps:$4 sm:$0xff]   ;;  %v3681_v53 = vld [vmem:[#allocation6 + $0x28] ss:$16 sps:$4 sm:$0xff]   ;;  %v3684_v54 = vld [vmem:[#allocation6 + $0x20] ss:$16 sps:$4 sm:$0xff]  }
  0x52   :  { %275 = vmatpush1.bf16.msra.mxu0 %v3619_v9  ;;  %787 = vmatpush1.bf16.msra.mxu1 %v3666_v42  ;;  %v3685_v55 = vld [vmem:[#allocation6 + $0x4] ss:$16 sps:$4 sm:$0xff]   ;;  %v3689_v56 = vld [vmem:[#allocation6 + $0xc] ss:$16 sps:$4 sm:$0xff]   ;;  %v3687_v57 = vld [vmem:[#allocation6 + $0x8] ss:$16 sps:$4 sm:$0xff]  }
  0x53   :  { %276 = vmatprep.subr.bf16.mxu0 %v3620_v10  ;;  %788 = vmatprep.subr.bf16.mxu1 %v3667_v43  ;;  %v3690_v58 = vld [vmem:[#allocation6] ss:$16 sps:$4 sm:$0xff]   ;;  %v3691_v59 = vld [vmem:[#allocation6 + $0x1e4] ss:$16 sps:$4 sm:$0xff]   ;;  %v3695_v60 = vld [vmem:[#allocation6 + $0x1ec] ss:$16 sps:$4 sm:$0xff]  }
  0x54   :  { %v3693_v61 = vld [vmem:[#allocation6 + $0x1e8] ss:$16 sps:$4 sm:$0xff]   ;;  %v3696_v62 = vld [vmem:[#allocation6 + $0x1e0] ss:$16 sps:$4 sm:$0xff]   ;;  %v3697_v63 = vld [vmem:[#allocation6 + $0x1c4] ss:$16 sps:$4 sm:$0xff]  }
  0x55   :  { %v3701_v0 = vld [vmem:[#allocation6 + $0x1cc] ss:$16 sps:$4 sm:$0xff]   ;;  %v3699_v1 = vld [vmem:[#allocation6 + $0x1c8] ss:$16 sps:$4 sm:$0xff]   ;;  %v3702_v2 = vld [vmem:[#allocation6 + $0x1c0] ss:$16 sps:$4 sm:$0xff]  }
  0x56   :  { %277 = vmatpush1.bf16.msra.mxu0 %v3622_v14  ;;  %789 = vmatpush1.bf16.msra.mxu1 %v3672_v46  ;;  %v3703_v3 = vld [vmem:[#allocation6 + $0x1a4] ss:$16 sps:$4 sm:$0xff]   ;;  %v3707_v4 = vld [vmem:[#allocation6 + $0x1ac] ss:$16 sps:$4 sm:$0xff]   ;;  %v3705_v5 = vld [vmem:[#allocation6 + $0x1a8] ss:$16 sps:$4 sm:$0xff]  }
  0x57   :  { %278 = vmatprep.subr.bf16.mxu0 %v3623_v17  ;;  %790 = vmatprep.subr.bf16.mxu1 %v3673_v47  ;;  %v3708_v6 = vld [vmem:[#allocation6 + $0x1a0] ss:$16 sps:$4 sm:$0xff]   ;;  %v3709_v7 = vld [vmem:[#allocation6 + $0x184] ss:$16 sps:$4 sm:$0xff]   ;;  %v3713_v8 = vld [vmem:[#allocation6 + $0x18c] ss:$16 sps:$4 sm:$0xff]  }
  0x58   :  { %v3711_v9 = vld [vmem:[#allocation6 + $0x188] ss:$16 sps:$4 sm:$0xff]   ;;  %v3714_v10 = vld [vmem:[#allocation6 + $0x180] ss:$16 sps:$4 sm:$0xff]   ;;  %v3715_v11 = vld [vmem:[#allocation6 + $0x164] ss:$16 sps:$4 sm:$0xff]  }
  0x59   :  { %v3719_v12 = vld [vmem:[#allocation6 + $0x16c] ss:$16 sps:$4 sm:$0xff]   ;;  %v3717_v13 = vld [vmem:[#allocation6 + $0x168] ss:$16 sps:$4 sm:$0xff]   ;;  %v3720_v14 = vld [vmem:[#allocation6 + $0x160] ss:$16 sps:$4 sm:$0xff]  }
  0x5a   :  { %279 = vmatpush1.bf16.msra.mxu0 %v3625_v20  ;;  %791 = vmatpush1.bf16.msra.mxu1 %v3678_v50  ;;  %v3721_v15 = vld [vmem:[#allocation6 + $0x144] ss:$16 sps:$4 sm:$0xff]   ;;  %v3723_v16 = vld [vmem:[#allocation6 + $0x148] ss:$16 sps:$4 sm:$0xff]   ;;  %v3725_v17 = vld [vmem:[#allocation6 + $0x14c] ss:$16 sps:$4 sm:$0xff]  }
  0x5b   :  { %280 = vmatprep.subr.bf16.mxu0 %v3626_v21  ;;  %792 = vmatprep.subr.bf16.mxu1 %v3679_v51  ;;  %v3726_v18 = vld [vmem:[#allocation6 + $0x140] ss:$16 sps:$4 sm:$0xff]   ;;  %v3727_v19 = vld [vmem:[#allocation6 + $0x124] ss:$16 sps:$4 sm:$0xff]   ;;  %v3731_v20 = vld [vmem:[#allocation6 + $0x12c] ss:$16 sps:$4 sm:$0xff]  }
  0x5c   :  { %v3729_v21 = vld [vmem:[#allocation6 + $0x128] ss:$16 sps:$4 sm:$0xff]   ;;  %v3732_v22 = vld [vmem:[#allocation6 + $0x120] ss:$16 sps:$4 sm:$0xff]   ;;  %vm3236_vm15 = vcmask 7168  }
  0x5d   :  { %v3958_v39 = vld [vmem:[#allocation9 + $0x8] sm:$0xff] }
  0x5e   :  { %281 = vmatpush1.bf16.msra.mxu0 %v3628_v23  ;;  %793 = vmatpush1.bf16.msra.mxu1 %v3684_v54  ;;  %v3733_v23 = vld [vmem:[#allocation6 + $0x104] ss:$16 sps:$4 sm:$0xff]  }
  0x5f   :  { %290 = vmatprep.subr.bf16.mxu0 %v3629_v24  ;;  %794 = vmatprep.subr.bf16.mxu1 %v3685_v55  ;;  %v3737_v24 = vld [vmem:[#allocation6 + $0x10c] ss:$16 sps:$4 sm:$0xff]  }
  0x62   :  { %291 = vmatpush2.bf16.msra.mxu0 %v3631_v25  ;;  %795 = vmatpush1.bf16.msra.mxu1 %v3690_v58  ;;  %v3735_v25 = vld [vmem:[#allocation6 + $0x108] ss:$16 sps:$4 sm:$0xff]  }
  0x63   :  { %292 = vmatprep.subr.bf16.mxu0 %v3632_v26  ;;  %796 = vmatprep.subr.bf16.mxu1 %v3691_v59  ;;  %v3738_v26 = vld [vmem:[#allocation6 + $0x100] ss:$16 sps:$4 sm:$0xff]  }
  0x66   :  { %293 = vmatpush2.bf16.msra.mxu0 %v3634_v27  ;;  %797 = vmatpush2.bf16.msra.mxu1 %v3696_v62  ;;  %v3935_v27 = vld [vmem:[#allocation7 + $0x1c0] sm:$0xff] }
  0x67   :  { %294 = vmatprep.subr.bf16.mxu0 %v3635_v28  ;;  %798 = vmatprep.subr.bf16.mxu1 %v3697_v63  ;;  %v3937_v28 = vld [vmem:[#allocation7 + $0x1e0] sm:$0xff] }
  0x6a   :  { %295 = vmatpush2.bf16.msra.mxu0 %v3637_v29  ;;  %799 = vmatpush2.bf16.msra.mxu1 %v3702_v2  ;;  %v3939_v29 = vld [vmem:[#allocation7 + $0x5c0] sm:$0xff] }
  0x6b   :  { %296 = vmatprep.subr.bf16.mxu0 %v3638_v30  ;;  %800 = vmatprep.subr.bf16.mxu1 %v3703_v3  ;;  %v3392_v30 = vcombine.low %v3935_v27, %v3937_v28 }
  0x6e   :  { %297 = vmatpush2.bf16.msra.mxu0 %v3640_v31  ;;  %801 = vmatpush2.bf16.msra.mxu1 %v3708_v6  ;;  %v3393_v31 = vcombine.high %v3935_v27, %v3937_v28  ;;  %v1038_v27 = vld [vmem:[#allocation7 + $0x100] sm:$0xff] }
  0x6f   :  { %821 = vmatprep.subr.bf16.mxu0 %v3647_v32  ;;  %802 = vmatprep.subr.bf16.mxu1 %v3709_v7  ;;  %v3945_v32 = vld [vmem:[#allocation7 + $0x5e0] sm:$0xff] }
  0x70   :  { %v1042_v28 = vld [vmem:[#allocation7 + $0x120] sm:$0xff] }
  0x71   :  { %299 = vmatmul.mubr.bf16.vlgmr.msra.gmra.mxu0 %v3245_v33  ;;  %v3520_v33 = vcombine.low %v3939_v29, %v3945_v32 }
  0x72   :  { %822 = vmatpush1.bf16.msra.mxu0 %v3645_v34  ;;  %803 = vmatpush2.bf16.msra.mxu1 %v3714_v10  ;;  %v3521_v34 = vcombine.high %v3939_v29, %v3945_v32  ;;  %v1170_v29 = vld [vmem:[#allocation7 + $0x520] sm:$0xff]  ;;  %v3368_v32 = vcombine.low %v1038_v27, %v1042_v28 }
  0x73   :  { %823 = vmatprep.subr.bf16.mxu0 %v3653_v35  ;;  %804 = vmatprep.subr.bf16.mxu1 %v3715_v11  ;;  %v128_v35 = vlaneseq }
  0x76   :  { %824 = vmatpush1.bf16.msra.mxu0 %v3651_v36  ;;  %805 = vmatpush2.bf16.msra.mxu1 %v3720_v14  ;;  %v3951_v36 = vshrl.u32 %v128_v35, 7 }
  0x77   :  { %825 = vmatprep.subr.bf16.mxu0 %v3659_v37  ;;  %806 = vmatprep.subr.bf16.mxu1 %v3721_v15 }
  0x78   :  { %v3954_v37 = vsub.s32 0, %v3951_v36 }
  0x7a   :  { %826 = vmatpush1.bf16.msra.mxu0 %v3657_v38  ;;  %807 = vmatpush2.bf16.msra.mxu1 %v3726_v18  ;;  %v3956_v38 = vld [vmem:[#allocation9] sm:$0xff] }
  0x7b   :  { %827 = vmatprep.subr.bf16.mxu0 %v3665_v40  ;;  %808 = vmatprep.subr.bf16.mxu1 %v3727_v19  ;;  %v131_v40 = vrot.slane %v3956_v38, %v3954_v37 }
  0x7e   :  { %828 = vmatpush1.bf16.msra.mxu0 %v3663_v41  ;;  %809 = vmatpush2.bf16.msra.mxu1 %v3732_v22  ;;  %v135_v41 = vrot.slane %v3958_v39, %v3954_v37  ;;  %v3965_v22 = vsub.s32 1, %v3951_v36 }
  0x7f   :  { %829 = vmatprep.subr.bf16.mxu0 %v3671_v44  ;;  %810 = vmatprep.subr.bf16.mxu1 %v3733_v23  ;;  %v3968_v23 = vsub.s32 2, %v3951_v36 }
  0x82   :  { %830 = vmatpush1.bf16.msra.mxu0 %v3669_v45  ;;  %811 = vmatpush2.bf16.msra.mxu1 %v3738_v26 }
  0x83   :  { %831 = vmatprep.subr.bf16.mxu0 %v3677_v48  ;;  %2574 = vmatprep.subr.bf16.mxu1 %v3393_v31 }
  0x86   :  { %832 = vmatpush1.bf16.msra.mxu0 %v3675_v49 }
  0x87   :  { %833 = vmatprep.subr.bf16.mxu0 %v3683_v52 }
  0x8a   :  { %834 = vmatpush1.bf16.msra.mxu0 %v3681_v53 }
  0x8b   :  { %835 = vmatprep.subr.bf16.mxu0 %v3689_v56 }
  0x8e   :  { %836 = vmatpush1.bf16.msra.mxu0 %v3687_v57 }
  0x8f   :  { %837 = vmatprep.subr.bf16.mxu0 %v3695_v60 }
  0x92   :  { %838 = vmatpush2.bf16.msra.mxu0 %v3693_v61 }
  0x93   :  { %839 = vmatprep.subr.bf16.mxu0 %v3701_v0 }
  0x96   :  { %840 = vmatpush2.bf16.msra.mxu0 %v3699_v1 }
  0x97   :  { %841 = vmatprep.subr.bf16.mxu0 %v3707_v4 }
  0x9a   :  { %842 = vmatpush2.bf16.msra.mxu0 %v3705_v5 }
  0x9b   :  { %843 = vmatprep.subr.bf16.mxu0 %v3713_v8 }
  0x9e   :  { %844 = vmatpush2.bf16.msra.mxu0 %v3711_v9 }
  0x9f   :  { %845 = vmatprep.subr.bf16.mxu0 %v3719_v12 }
  0xa2   :  { %846 = vmatpush2.bf16.msra.mxu0 %v3717_v13 }
  0xa3   :  { %847 = vmatprep.subr.bf16.mxu0 %v3725_v17 }
  0xa6   :  { %848 = vmatpush2.bf16.msra.mxu0 %v3723_v16 }
  0xa7   :  { %849 = vmatprep.subr.bf16.mxu0 %v3731_v20 }
  0xaa   :  { %850 = vmatpush2.bf16.msra.mxu0 %v3729_v21 }
  0xab   :  { %851 = vmatprep.subr.bf16.mxu0 %v3737_v24 }
  0xae   :  { %852 = vmatpush2.bf16.msra.mxu0 %v3735_v25  ;;  %v355_v25 = vrot.slane %v3956_v38, %v3965_v22 }
  0xaf   :  { %2615 = vmatprep.subr.bf16.mxu0 %v3521_v34  ;;  %v365_v34 = vrot.slane %v3956_v38, %v3968_v23 }
 0x131   :  { %v300_v42 = vpop.f32.mrf.mxu0 }
 0x132   :  { %v301_v43 = vadd.f32 %v300_v42, %v131_v40  ;;  %v359_v40 = vrot.slane %v3958_v39, %v3965_v22 }
 0x133   :  { %v302_v44 = vpop.f32.mrf.mxu0 }
 0x134   :  { %v307_v45 = vrot.slane %v301_v43, 4  ;;  %v322_v46 = vmul.f32 %v301_v43, %v301_v43  ;;  %v303_v47 = vadd.f32 %v302_v44, %v135_v41 }
 0x135   :  { %v304_v48 = vpop.f32.mrf.mxu0 }
 0x136   :  { %v308_v49 = vadd.f32 %v307_v45, %v301_v43  ;;  %v324_v50 = vrot.slane %v322_v46, 4  ;;  %v313_v51 = vrot.slane %v303_v47, 4  ;;  %v323_v52 = vmul.f32 %v303_v47, %v303_v47 }
 0x137   :  { %v305_v53 = vpop.f32.mrf.mxu0  ;;  %v369_v45 = vrot.slane %v3958_v39, %v3968_v23 }
 0x138   :  { %v309_v54 = vrot.slane %v308_v49, 2  ;;  %v325_v55 = vadd.f32 %v324_v50, %v322_v46  ;;  %v314_v56 = vadd.f32 %v313_v51, %v303_v47  ;;  %v330_v57 = vrot.slane %v323_v52, 4  ;;  %v1054_v51 = vld [vmem:[#allocation7 + $0x180] sm:$0xff] }
 0x139   :  { %v1058_v53 = vld [vmem:[#allocation7 + $0x1a0] sm:$0xff] }
 0x13a   :  { %v310_v58 = vadd.f32 %v309_v54, %v308_v49  ;;  %v326_v59 = vrot.slane %v325_v55, 2  ;;  %v315_v60 = vrot.slane %v314_v56, 2  ;;  %v331_v61 = vadd.f32 %v330_v57, %v323_v52  ;;  %v1186_v54 = vld [vmem:[#allocation7 + $0x5a0] sm:$0xff] }
 0x13c   :  { %v311_v62 = vrot.slane %v310_v58, 1  ;;  %v327_v63 = vadd.f32 %v326_v59, %v325_v55  ;;  %v316_v0 = vadd.f32 %v315_v60, %v314_v56  ;;  %v332_v1 = vrot.slane %v331_v61, 2  ;;  %v1046_v60 = vld [vmem:[#allocation7 + $0x140] sm:$0xff] }
 0x13e   :  { %v312_v2 = vadd.f32 %v311_v62, %v310_v58  ;;  %v328_v3 = vrot.slane %v327_v63, 1  ;;  %v317_v4 = vrot.slane %v316_v0, 1  ;;  %v333_v5 = vadd.f32 %v332_v1, %v331_v61  ;;  %v1050_v61 = vld [vmem:[#allocation7 + $0x160] sm:$0xff] }
 0x13f   :  { %v3385_v58 = vcombine.high %v1054_v51, %v1058_v53  ;;  %v1174_v62 = vld [vmem:[#allocation7 + $0x540] sm:$0xff] }
 0x140   :  { %v320_v6 = vmul.f32 0.125, %v312_v2  ;;  %v329_v7 = vadd.f32 %v328_v3, %v327_v63  ;;  %v318_v8 = vadd.f32 %v317_v4, %v316_v0  ;;  %v334_v9 = vrot.slane %v333_v5, 1  ;;  %v1178_v63 = vld [vmem:[#allocation7 + $0x560] sm:$0xff] }
 0x141   :  { %v3384_v0 = vcombine.low %v1054_v51, %v1058_v53  ;;  %v3377_v2 = vcombine.high %v1046_v60, %v1050_v61  ;;  %v3505_v3 = vcombine.high %v1174_v62, %v1178_v63  ;;  %v3376_v4 = vcombine.low %v1046_v60, %v1050_v61  ;;  %v1126_v53 = vld [vmem:[#allocation7 + $0x3c0] sm:$0xff] }
 0x142   :  { %v336_v10 = vmul.f32 0.125, %v329_v7  ;;  %v338_v11 = vmul.f32 %v320_v6, %v320_v6  ;;  %v321_v12 = vmul.f32 0.125, %v318_v8  ;;  %v335_v13 = vadd.f32 %v334_v9, %v333_v5  ;;  %v1030_v8 = vld [vmem:[#allocation7 + $0xc0] sm:$0xff] }
 0x143   :  { %v344_v24 = vsub.f32 %v301_v43, %v320_v6  ;;  %v3504_v5 = vcombine.low %v1174_v62, %v1178_v63  ;;  %v1166_v6 = vld [vmem:[#allocation7 + $0x500] sm:$0xff] }
 0x144   :  { %v340_v14 = vsub.f32 %v336_v10, %v338_v11  ;;  %v339_v15 = vmul.f32 %v321_v12, %v321_v12  ;;  %v337_v16 = vmul.f32 0.125, %v335_v13  ;;  %v345_v35 = vsub.f32 %v303_v47, %v321_v12  ;;  %v1182_v47 = vld [vmem:[#allocation7 + $0x580] sm:$0xff] }
 0x145   :  { %v3513_v59 = vcombine.high %v1182_v47, %v1186_v54  ;;  %v3512_v1 = vcombine.low %v1182_v47, %v1186_v54  ;;  %v3497_v7 = vcombine.high %v1166_v6, %v1170_v29  ;;  %v1034_v9 = vld [vmem:[#allocation7 + $0xe0] sm:$0xff] }
 0x146   :  { %v342_v17 = vmax.f32 %v340_v14, 0.0  ;;  %v341_v18 = vsub.f32 %v337_v16, %v339_v15  ;;  %v1158_v10 = vld [vmem:[#allocation7 + $0x4c0] sm:$0xff]  ;;  %v3361_v11 = vcombine.high %v1030_v8, %v1034_v9  ;;  %v3360_v13 = vcombine.low %v1030_v8, %v1034_v9 }
 0x147   :  { %v1162_v12 = vld [vmem:[#allocation7 + $0x4e0] sm:$0xff] }
 0x148   :  { %v346_v19 = vadd.f32 1e-05, %v342_v17  ;;  %v343_v20 = vmax.f32 %v341_v18, 0.0  ;;  %v3488_v14 = vcombine.low %v1158_v10, %v1162_v12  ;;  %v3489_v15 = vcombine.high %v1158_v10, %v1162_v12  ;;  %v1022_v16 = vld [vmem:[#allocation7 + $0x80] sm:$0xff] }
 0x149   :  { %v1026_v17 = vld [vmem:[#allocation7 + $0xa0] sm:$0xff] }
 0x14a   :  { %3739 = vrsqrt.f32 %v346_v19  ;;  %v347_v21 = vadd.f32 1e-05, %v343_v20  ;;  %v1150_v18 = vld [vmem:[#allocation7 + $0x480] sm:$0xff]  ;;  %v3353_v19 = vcombine.high %v1022_v16, %v1026_v17 }
 0x14b   :  { %v1154_v20 = vld [vmem:[#allocation7 + $0x4a0] sm:$0xff] }
 0x14c   :  { %3741 = vrsqrt.f32 %v347_v21  ;;  %v3352_v21 = vcombine.low %v1022_v16, %v1026_v17  ;;  %v1130_v47 = vld [vmem:[#allocation7 + $0x3e0] sm:$0xff] }
 0x14d   :  { %v1254_v54 = vld [vmem:[#allocation7 + $0x7c0] sm:$0xff] }
 0x14e   :  { %v1118_v60 = vld [vmem:[#allocation7 + $0x380] sm:$0xff] }
 0x14f   :  { %v1122_v61 = vld [vmem:[#allocation7 + $0x3a0] sm:$0xff] }
 0x150   :  { %v1246_v62 = vld [vmem:[#allocation7 + $0x780] sm:$0xff]  ;;  %v3449_v63 = vcombine.high %v1118_v60, %v1122_v61 }
 0x151   :  { %v1230_v8 = vld [vmem:[#allocation7 + $0x700] sm:$0xff] }
 0x152   :  { %v1234_v10 = vld [vmem:[#allocation7 + $0x720] sm:$0xff] }
 0x153   :  { %v3560_v12 = vcombine.low %v1230_v8, %v1234_v10  ;;  %v1222_v16 = vld [vmem:[#allocation7 + $0x6c0] sm:$0xff] }
 0x157   :  { %v3740_v26 = vpop.eup %3739 }
 0x158   :  { %v350_v31 = vmul.f32 %v3740_v26, %v344_v24  ;;  %v3480_v24 = vcombine.low %v1150_v18, %v1154_v20  ;;  %v1014_v26 = vld [vmem:[#allocation7 + $0x40] sm:$0xff] }
 0x159   :  { %v3742_v41 = vpop.eup %3741 }
 0x15a   :  { %v360_v42 = vmul.f32 %v355_v25, %v350_v31  ;;  %v351_v44 = vmul.f32 %v3742_v41, %v345_v35  ;;  %v3481_v25 = vcombine.high %v1150_v18, %v1154_v20  ;;  %v1018_v31 = vld [vmem:[#allocation7 + $0x60] sm:$0xff] }
 0x15b   :  { %v3345_v35 = vcombine.high %v1014_v26, %v1018_v31  ;;  %v3344_v41 = vcombine.low %v1014_v26, %v1018_v31  ;;  %v1226_v18 = vld [vmem:[#allocation7 + $0x6e0] sm:$0xff] }
 0x15c   :  { %v370_v46 = vadd.f32 %v365_v34, %v360_v42  ;;  %v361_v43 = vmul.f32 %v359_v40, %v351_v44  ;;  %v1142_v34 = vld [vmem:[#allocation7 + $0x440] sm:$0xff]  ;;  %v3552_v20 = vcombine.low %v1222_v16, %v1226_v18 }
 0x15d   :  { %v1146_v40 = vld [vmem:[#allocation7 + $0x460] sm:$0xff] }
 0x15e   :  { %v374_v48 = vmul.f32 0.2, %v370_v46  ;;  %v371_v49 = vadd.f32 %v369_v45, %v361_v43  ;;  %vm372_vm1 = vcmp.ge.f32.partialorder %v370_v46, 0.0  ;;  %v3472_v42 = vcombine.low %v1142_v34, %v1146_v40  ;;  %v1006_v45 = vld [vmem:[#allocation7] sm:$0xff] }
 0x15f   :  { %v3473_v44 = vcombine.high %v1142_v34, %v1146_v40  ;;  %v1134_v43 = vld [vmem:[#allocation7 + $0x400] sm:$0xff] }
 0x160   :  { %vm373_vm2 = vcmp.ge.f32.partialorder %v371_v49, 0.0  ;;  %v375_v50 = vmul.f32 0.2, %v371_v49  ;;  %v376_v52 = vsel %vm372_vm1, %v370_v46, %v374_v48  ;;  %v1010_v46 = vld [vmem:[#allocation7 + $0x20] sm:$0xff] }
 0x161   :  { %v378_v57 = vpack.c.bf16 %v376_v52, %v376_v52  ;;  %v3337_v48 = vcombine.high %v1006_v45, %v1010_v46  ;;  %v1214_v26 = vld [vmem:[#allocation7 + $0x680] sm:$0xff] }
 0x162   :  { %v377_v55 = vsel %vm373_vm2, %v371_v49, %v375_v50  ;;  %v1138_v49 = vld [vmem:[#allocation7 + $0x420] sm:$0xff]  ;;  %v3336_v50 = vcombine.low %v1006_v45, %v1010_v46 }
 0x163   :  { %v379_v56 = vpack.c.bf16 %v377_v55, %v377_v55  ;;  %v3464_v51 = vcombine.low %v1134_v43, %v1138_v49  ;;  %v3465_v52 = vcombine.high %v1134_v43, %v1138_v49  ;;  %v3457_v55 = vcombine.high %v1126_v53, %v1130_v47  ;;  %v1218_v34 = vld [vmem:[#allocation7 + $0x6a0] sm:$0xff] }
 0x164   :  { %v3544_v40 = vcombine.low %v1214_v26, %v1218_v34  ;;  %v1206_v45 = vld [vmem:[#allocation7 + $0x640] sm:$0xff] }
 0x165   :  { %812 = vmatprep.mubr.bf16.mxu1 %v379_v56  ;;  %853 = vmatprep.mubr.bf16.mxu0 %v379_v56  ;;  %v1258_v56 = vld [vmem:[#allocation7 + $0x7e0] sm:$0xff] }
 0x166   :  { %813 = vmatmul.mubr.bf16.vlgmr.msra.gmra.mxu1 %v378_v57  ;;  %854 = vmatmul.mubr.bf16.vlgmr.msra.gmra.mxu0 %v378_v57  ;;  %v3456_v57 = vcombine.low %v1126_v53, %v1130_v47  ;;  %v1210_v43 = vld [vmem:[#allocation7 + $0x660] sm:$0xff] }
 0x167   :  { %2575 = vmatpush1.bf16.msra.mxu1 %v3392_v30  ;;  %2616 = vmatpush1.bf16.msra.mxu0 %v3520_v33  ;;  %v3369_v30 = vcombine.high %v1038_v27, %v1042_v28  ;;  %v3496_v33 = vcombine.low %v1166_v6, %v1170_v29  ;;  %v1238_v27 = vld [vmem:[#allocation7 + $0x740] sm:$0xff]  ;;  %v3536_v49 = vcombine.low %v1206_v45, %v1210_v43 }
 0x168   :  { %2576 = vmatprep.subr.bf16.mxu1 %v3385_v58  ;;  %2617 = vmatprep.subr.bf16.mxu0 %v3513_v59  ;;  %v3584_v58 = vcombine.low %v1254_v54, %v1258_v56  ;;  %v3585_v59 = vcombine.high %v1254_v54, %v1258_v56  ;;  %v1198_v53 = vld [vmem:[#allocation7 + $0x600] sm:$0xff] }
 0x169   :  { %v1202_v54 = vld [vmem:[#allocation7 + $0x620] sm:$0xff] }
 0x16a   :  { %v3529_v56 = vcombine.high %v1198_v53, %v1202_v54 }
 0x16b   :  { %2577 = vmatpush1.bf16.msra.mxu1 %v3384_v0  ;;  %2618 = vmatpush1.bf16.msra.mxu0 %v3512_v1  ;;  %v1250_v0 = vld [vmem:[#allocation7 + $0x7a0] sm:$0xff]  ;;  %v3448_v1 = vcombine.low %v1118_v60, %v1122_v61  ;;  %v3988_v60 = vld [vmem:[#allocation7 + $0x5c8] sm:$0xff] }
 0x16c   :  { %2578 = vmatprep.subr.bf16.mxu1 %v3377_v2  ;;  %2619 = vmatprep.subr.bf16.mxu0 %v3505_v3  ;;  %v3576_v2 = vcombine.low %v1246_v62, %v1250_v0  ;;  %v3577_v3 = vcombine.high %v1246_v62, %v1250_v0  ;;  %v3992_v62 = vld [vmem:[#allocation7 + $0x5e8] sm:$0xff] }
 0x16d   :  { %v3522_v0 = vcombine.low %v3988_v60, %v3992_v62 }
 0x16f   :  { %2579 = vmatpush1.bf16.msra.mxu1 %v3376_v4  ;;  %2620 = vmatpush1.bf16.msra.mxu0 %v3504_v5  ;;  %v1110_v4 = vld [vmem:[#allocation7 + $0x340] sm:$0xff] }
 0x170   :  { %2580 = vmatprep.subr.bf16.mxu1 %v3369_v30  ;;  %2621 = vmatprep.subr.bf16.mxu0 %v3497_v7  ;;  %v1114_v5 = vld [vmem:[#allocation7 + $0x360] sm:$0xff] }
 0x171   :  { %v3441_v28 = vcombine.high %v1110_v4, %v1114_v5  ;;  %v1242_v30 = vld [vmem:[#allocation7 + $0x760] sm:$0xff]  ;;  %v3440_v6 = vcombine.low %v1110_v4, %v1114_v5 }
 0x172   :  { %v3568_v29 = vcombine.low %v1238_v27, %v1242_v30  ;;  %v1106_v7 = vld [vmem:[#allocation7 + $0x320] sm:$0xff] }
 0x173   :  { %2581 = vmatpush1.bf16.msra.mxu1 %v3368_v32  ;;  %2622 = vmatpush1.bf16.msra.mxu0 %v3496_v33  ;;  %v3569_v32 = vcombine.high %v1238_v27, %v1242_v30  ;;  %v1102_v33 = vld [vmem:[#allocation7 + $0x300] sm:$0xff]  ;;  %v4005_v27 = vld [vmem:[#allocation9 + $0x18] sm:$0xff] }
 0x174   :  { %2582 = vmatprep.subr.bf16.mxu1 %v3361_v11  ;;  %2623 = vmatprep.subr.bf16.mxu0 %v3489_v15  ;;  %v3433_v9 = vcombine.high %v1102_v33, %v1106_v7  ;;  %v3432_v11 = vcombine.low %v1102_v33, %v1106_v7  ;;  %v1098_v15 = vld [vmem:[#allocation7 + $0x2e0] sm:$0xff] }
 0x177   :  { %2583 = vmatpush1.bf16.msra.mxu1 %v3360_v13  ;;  %2624 = vmatpush1.bf16.msra.mxu0 %v3488_v14  ;;  %v3561_v13 = vcombine.high %v1230_v8, %v1234_v10  ;;  %v1094_v14 = vld [vmem:[#allocation7 + $0x2c0] sm:$0xff] }
 0x178   :  { %2584 = vmatprep.subr.bf16.mxu1 %v3353_v19  ;;  %2625 = vmatprep.subr.bf16.mxu0 %v3481_v25  ;;  %v3425_v17 = vcombine.high %v1094_v14, %v1098_v15  ;;  %v3424_v19 = vcombine.low %v1094_v14, %v1098_v15  ;;  %v1090_v25 = vld [vmem:[#allocation7 + $0x2a0] sm:$0xff] }
 0x17b   :  { %2585 = vmatpush1.bf16.msra.mxu1 %v3352_v21  ;;  %2626 = vmatpush1.bf16.msra.mxu0 %v3480_v24  ;;  %v3553_v21 = vcombine.high %v1222_v16, %v1226_v18  ;;  %v1086_v24 = vld [vmem:[#allocation7 + $0x280] sm:$0xff] }
 0x17c   :  { %2586 = vmatprep.subr.bf16.mxu1 %v3345_v35  ;;  %2627 = vmatprep.subr.bf16.mxu0 %v3473_v44  ;;  %v3417_v31 = vcombine.high %v1086_v24, %v1090_v25  ;;  %v3416_v35 = vcombine.low %v1086_v24, %v1090_v25  ;;  %v1082_v44 = vld [vmem:[#allocation7 + $0x260] sm:$0xff] }
 0x17f   :  { %2587 = vmatpush1.bf16.msra.mxu1 %v3344_v41  ;;  %2628 = vmatpush1.bf16.msra.mxu0 %v3472_v42  ;;  %v3545_v41 = vcombine.high %v1214_v26, %v1218_v34  ;;  %v1078_v42 = vld [vmem:[#allocation7 + $0x240] sm:$0xff] }
 0x180   :  { %2588 = vmatprep.subr.bf16.mxu1 %v3337_v48  ;;  %2629 = vmatprep.subr.bf16.mxu0 %v3465_v52  ;;  %v3409_v46 = vcombine.high %v1078_v42, %v1082_v44  ;;  %v3408_v48 = vcombine.low %v1078_v42, %v1082_v44  ;;  %v1074_v52 = vld [vmem:[#allocation7 + $0x220] sm:$0xff] }
 0x183   :  { %2589 = vmatpush1.bf16.msra.mxu1 %v3336_v50  ;;  %2630 = vmatpush1.bf16.msra.mxu0 %v3464_v51  ;;  %v3537_v50 = vcombine.high %v1206_v45, %v1210_v43  ;;  %v1070_v51 = vld [vmem:[#allocation7 + $0x200] sm:$0xff] }
 0x184   :  { %2590 = vmatprep.subr.bf16.mxu1 %v3457_v55  ;;  %2631 = vmatprep.subr.bf16.mxu0 %v3585_v59  ;;  %v3401_v47 = vcombine.high %v1070_v51, %v1074_v52  ;;  %v3400_v55 = vcombine.low %v1070_v51, %v1074_v52  ;;  %v3986_v59 = vld [vmem:[#allocation7 + $0x1e8] sm:$0xff] }
 0x187   :  { %2591 = vmatpush2.bf16.msra.mxu1 %v3456_v57  ;;  %2632 = vmatpush2.bf16.msra.mxu0 %v3584_v58  ;;  %v3528_v57 = vcombine.low %v1198_v53, %v1202_v54  ;;  %v3984_v58 = vld [vmem:[#allocation7 + $0x1c8] sm:$0xff] }
 0x188   :  { %2592 = vmatprep.subr.bf16.mxu1 %v3449_v63  ;;  %2633 = vmatprep.subr.bf16.mxu0 %v3577_v3  ;;  %v3395_v61 = vcombine.high %v3984_v58, %v3986_v59  ;;  %v3394_v63 = vcombine.low %v3984_v58, %v3986_v59  ;;  %v4001_v3 = vld [vmem:[#allocation9 + $0x10] sm:$0xff] }
 0x18b   :  { %2593 = vmatpush2.bf16.msra.mxu1 %v3448_v1  ;;  %2634 = vmatpush2.bf16.msra.mxu0 %v3576_v2  ;;  %v3523_v1 = vcombine.high %v3988_v60, %v3992_v62  ;;  %v446_v2 = vsub.s32 3, %v3951_v36 }
 0x18c   :  { %2594 = vmatprep.subr.bf16.mxu1 %v3441_v28  ;;  %2635 = vmatprep.subr.bf16.mxu0 %v3569_v32 }
 0x18d   :  { %v447_v4 = vrot.slane %v3956_v38, %v446_v2  ;;  %v455_v5 = vrot.slane %v4001_v3, %v446_v2 }
 0x18f   :  { %2595 = vmatpush2.bf16.msra.mxu1 %v3440_v6  ;;  %2636 = vmatpush2.bf16.msra.mxu0 %v3568_v29  ;;  %v451_v6 = vrot.slane %v3958_v39, %v446_v2  ;;  %v459_v29 = vrot.slane %v4005_v27, %v446_v2 }
 0x190   :  { %2596 = vmatprep.subr.bf16.mxu1 %v3433_v9  ;;  %2637 = vmatprep.subr.bf16.mxu0 %v3561_v13 }
 0x193   :  { %2597 = vmatpush2.bf16.msra.mxu1 %v3432_v11  ;;  %2638 = vmatpush2.bf16.msra.mxu0 %v3560_v12 }
 0x194   :  { %2598 = vmatprep.subr.bf16.mxu1 %v3425_v17  ;;  %2639 = vmatprep.subr.bf16.mxu0 %v3553_v21 }
 0x197   :  { %2599 = vmatpush2.bf16.msra.mxu1 %v3424_v19  ;;  %2640 = vmatpush2.bf16.msra.mxu0 %v3552_v20 }
 0x198   :  { %2600 = vmatprep.subr.bf16.mxu1 %v3417_v31  ;;  %2641 = vmatprep.subr.bf16.mxu0 %v3545_v41 }
 0x19b   :  { %2601 = vmatpush2.bf16.msra.mxu1 %v3416_v35  ;;  %2642 = vmatpush2.bf16.msra.mxu0 %v3544_v40 }
 0x19c   :  { %2602 = vmatprep.subr.bf16.mxu1 %v3409_v46  ;;  %2643 = vmatprep.subr.bf16.mxu0 %v3537_v50 }
 0x19f   :  { %2603 = vmatpush2.bf16.msra.mxu1 %v3408_v48  ;;  %2644 = vmatpush2.bf16.msra.mxu0 %v3536_v49 }
 0x1a0   :  { %2604 = vmatprep.subr.bf16.mxu1 %v3401_v47  ;;  %2645 = vmatprep.subr.bf16.mxu0 %v3529_v56 }
 0x1a3   :  { %2605 = vmatpush2.bf16.msra.mxu1 %v3400_v55  ;;  %2646 = vmatpush2.bf16.msra.mxu0 %v3528_v57 }
 0x1a4   :  { %2656 = vmatprep.subr.bf16.mxu1 %v3395_v61  ;;  %2697 = vmatprep.subr.bf16.mxu0 %v3523_v1 }
 0x226   :  { %v814_v28 = vpop.f32.mrf.mxu1  ;;  %v855_v30 = vpop.f32.mrf.mxu0 }
 0x227   :  { %v4009_v32 = vadd.f32 %v814_v28, %v447_v4  ;;  %v4011_v33 = vadd.f32 %v855_v30, %v455_v5 }
 0x228   :  { %v816_v7 = vpop.f32.mrf.mxu1  ;;  %v857_v8 = vpop.f32.mrf.mxu0 }
 0x229   :  { %v862_v9 = vrot.slane %v4009_v32, 4  ;;  %v890_v10 = vmul.f32 %v4009_v32, %v4009_v32  ;;  %v874_v11 = vrot.slane %v4011_v33, 4  ;;  %v892_v12 = vmul.f32 %v4011_v33, %v4011_v33 }
 0x22a   :  { %v4019_v13 = vadd.f32 %v816_v7, %v451_v6  ;;  %v4021_v14 = vadd.f32 %v857_v8, %v459_v29  ;;  %v818_v15 = vpop.f32.mrf.mxu1  ;;  %v859_v16 = vpop.f32.mrf.mxu0 }
 0x22b   :  { %v863_v17 = vadd.f32 %v862_v9, %v4009_v32  ;;  %v894_v18 = vrot.slane %v890_v10, 4  ;;  %v875_v19 = vadd.f32 %v874_v11, %v4011_v33  ;;  %v906_v20 = vrot.slane %v892_v12, 4 }
 0x22c   :  { %v868_v21 = vrot.slane %v4019_v13, 4  ;;  %v891_v24 = vmul.f32 %v4019_v13, %v4019_v13  ;;  %v880_v25 = vrot.slane %v4021_v14, 4  ;;  %v893_v26 = vmul.f32 %v4021_v14, %v4021_v14  ;;  %v819_v31 = vpop.f32.mrf.mxu1  ;;  %v860_v34 = vpop.f32.mrf.mxu0 }
 0x22d   :  { %v864_v35 = vrot.slane %v863_v17, 2  ;;  %v895_v40 = vadd.f32 %v894_v18, %v890_v10  ;;  %v876_v41 = vrot.slane %v875_v19, 2  ;;  %v907_v42 = vadd.f32 %v906_v20, %v892_v12 }
 0x22e   :  { %v869_v44 = vadd.f32 %v868_v21, %v4019_v13  ;;  %v900_v45 = vrot.slane %v891_v24, 4  ;;  %v881_v46 = vadd.f32 %v880_v25, %v4021_v14  ;;  %v912_v43 = vrot.slane %v893_v26, 4 }
 0x22f   :  { %v865_v48 = vadd.f32 %v864_v35, %v863_v17  ;;  %v896_v49 = vrot.slane %v895_v40, 2  ;;  %v877_v50 = vadd.f32 %v876_v41, %v875_v19  ;;  %v908_v51 = vrot.slane %v907_v42, 2 }
 0x230   :  { %v870_v52 = vrot.slane %v869_v44, 2  ;;  %v901_v53 = vadd.f32 %v900_v45, %v891_v24  ;;  %v882_v47 = vrot.slane %v881_v46, 2  ;;  %v913_v54 = vadd.f32 %v912_v43, %v893_v26 }
 0x231   :  { %v866_v55 = vrot.slane %v865_v48, 1  ;;  %v897_v56 = vadd.f32 %v896_v49, %v895_v40  ;;  %v878_v57 = vrot.slane %v877_v50, 1  ;;  %v909_v61 = vadd.f32 %v908_v51, %v907_v42 }
 0x232   :  { %v871_v1 = vadd.f32 %v870_v52, %v869_v44  ;;  %v902_v2 = vrot.slane %v901_v53, 2  ;;  %v883_v4 = vadd.f32 %v882_v47, %v881_v46  ;;  %v914_v5 = vrot.slane %v913_v54, 2 }
 0x233   :  { %v867_v28 = vadd.f32 %v866_v55, %v865_v48  ;;  %v898_v30 = vrot.slane %v897_v56, 1  ;;  %v879_v6 = vadd.f32 %v878_v57, %v877_v50  ;;  %v910_v29 = vrot.slane %v909_v61, 1 }
 0x234   :  { %v872_v7 = vrot.slane %v871_v1, 1  ;;  %v903_v8 = vadd.f32 %v902_v2, %v901_v53  ;;  %v884_v9 = vrot.slane %v883_v4, 1  ;;  %v915_v10 = vadd.f32 %v914_v5, %v913_v54 }
 0x235   :  { %v886_v11 = vmul.f32 0.125, %v867_v28  ;;  %v899_v12 = vadd.f32 %v898_v30, %v897_v56  ;;  %v888_v15 = vmul.f32 0.125, %v879_v6  ;;  %v911_v16 = vadd.f32 %v910_v29, %v909_v61 }
 0x236   :  { %v873_v17 = vadd.f32 %v872_v7, %v871_v1  ;;  %v904_v18 = vrot.slane %v903_v8, 1  ;;  %v885_v19 = vadd.f32 %v884_v9, %v883_v4  ;;  %v916_v20 = vrot.slane %v915_v10, 1 }
 0x237   :  { %v918_v21 = vmul.f32 0.125, %v899_v12  ;;  %v922_v24 = vmul.f32 %v886_v11, %v886_v11  ;;  %v920_v25 = vmul.f32 0.125, %v911_v16  ;;  %v924_v26 = vmul.f32 %v888_v15, %v888_v15 }
 0x238   :  { %v887_v31 = vmul.f32 0.125, %v873_v17  ;;  %v905_v34 = vadd.f32 %v904_v18, %v903_v8  ;;  %v889_v40 = vmul.f32 0.125, %v885_v19  ;;  %v917_v41 = vadd.f32 %v916_v20, %v915_v10 }
 0x239   :  { %v926_v35 = vsub.f32 %v918_v21, %v922_v24  ;;  %v928_v42 = vsub.f32 %v920_v25, %v924_v26  ;;  %v952_v57 = vsub.s32 4, %v3951_v36  ;;  %v972_v61 = vsub.s32 5, %v3951_v36 }
 0x23a   :  { %v919_v44 = vmul.f32 0.125, %v905_v34  ;;  %v923_v45 = vmul.f32 %v887_v31, %v887_v31  ;;  %v921_v43 = vmul.f32 0.125, %v917_v41  ;;  %v925_v48 = vmul.f32 %v889_v40, %v889_v40  ;;  %v1055_v41 = vld [vmem:[#allocation7 + $0x188] sm:$0xff] }
 0x23b   :  { %v930_v46 = vmax.f32 %v926_v35, 0.0  ;;  %v932_v49 = vmax.f32 %v928_v42, 0.0  ;;  %v934_v1 = vsub.f32 %v4009_v32, %v886_v11  ;;  %v953_v2 = vrot.slane %v3956_v38, %v952_v57  ;;  %v1059_v42 = vld [vmem:[#allocation7 + $0x1a8] sm:$0xff] }
 0x23c   :  { %v927_v50 = vsub.f32 %v919_v44, %v923_v45  ;;  %v929_v52 = vsub.f32 %v921_v43, %v925_v48  ;;  %v936_v5 = vsub.f32 %v4011_v33, %v888_v15  ;;  %v961_v28 = vrot.slane %v4001_v3, %v952_v57  ;;  %v1183_v45 = vld [vmem:[#allocation7 + $0x588] sm:$0xff] }
 0x23d   :  { %v938_v51 = vadd.f32 1e-05, %v930_v46  ;;  %v940_v53 = vadd.f32 1e-05, %v932_v49  ;;  %v973_v29 = vrot.slane %v3956_v38, %v972_v61  ;;  %v935_v8 = vsub.f32 %v4019_v13, %v887_v31  ;;  %v1187_v46 = vld [vmem:[#allocation7 + $0x5a8] sm:$0xff] }
 0x23e   :  { %v931_v47 = vmax.f32 %v927_v50, 0.0  ;;  %v933_v54 = vmax.f32 %v929_v52, 0.0  ;;  %v957_v9 = vrot.slane %v3958_v39, %v952_v57  ;;  %v981_v10 = vrot.slane %v4001_v3, %v972_v61  ;;  %v1051_v52 = vld [vmem:[#allocation7 + $0x168] sm:$0xff] }
 0x23f   :  { %3743 = vrsqrt.f32 %v938_v51  ;;  %v937_v11 = vsub.f32 %v4021_v14, %v889_v40  ;;  %v965_v16 = vrot.slane %v4005_v27, %v952_v57  ;;  %v977_v18 = vrot.slane %v3958_v39, %v972_v61  ;;  %v1047_v51 = vld [vmem:[#allocation7 + $0x148] sm:$0xff] }
 0x240   :  { %3745 = vrsqrt.f32 %v940_v53  ;;  %v939_v55 = vadd.f32 1e-05, %v931_v47  ;;  %v941_v56 = vadd.f32 1e-05, %v933_v54  ;;  %v985_v38 = vrot.slane %v4005_v27, %v972_v61  ;;  %v1175_v47 = vld [vmem:[#allocation7 + $0x548] sm:$0xff] }
 0x241   :  { %v3387_v50 = vcombine.high %v1055_v41, %v1059_v42  ;;  %v3515_v53 = vcombine.high %v1183_v45, %v1187_v46  ;;  %v1179_v54 = vld [vmem:[#allocation7 + $0x568] sm:$0xff]  ;;  %v3379_v57 = vcombine.high %v1047_v51, %v1051_v52  ;;  %v3378_v58 = vcombine.low %v1047_v51, %v1051_v52 }
 0x242   :  { %3747 = vrsqrt.f32 %v939_v55  ;;  %v3386_v55 = vcombine.low %v1055_v41, %v1059_v42  ;;  %v3507_v61 = vcombine.high %v1175_v47, %v1179_v54  ;;  %v3506_v59 = vcombine.low %v1175_v47, %v1179_v54  ;;  %v1131_v41 = vld [vmem:[#allocation7 + $0x3e8] sm:$0xff] }
 0x243   :  { %3749 = vrsqrt.f32 %v941_v56  ;;  %v3514_v56 = vcombine.low %v1183_v45, %v1187_v46  ;;  %v1255_v42 = vld [vmem:[#allocation7 + $0x7c8] sm:$0xff] }
 0x244   :  { %v1119_v52 = vld [vmem:[#allocation7 + $0x388] sm:$0xff] }
 0x245   :  { %v1247_v47 = vld [vmem:[#allocation7 + $0x788] sm:$0xff] }
 0x246   :  { %v1251_v54 = vld [vmem:[#allocation7 + $0x7a8] sm:$0xff] }
 0x24c   :  { %v3744_v4 = vpop.eup %3743 }
 0x24d   :  { %v3746_v30 = vpop.eup %3745  ;;  %v946_v6 = vmul.f32 %v3744_v4, %v934_v1  ;;  %v1039_v1 = vld [vmem:[#allocation7 + $0x108] sm:$0xff] }
 0x24e   :  { %v948_v7 = vmul.f32 %v3746_v30, %v936_v5  ;;  %v1167_v4 = vld [vmem:[#allocation7 + $0x508] sm:$0xff] }
 0x24f   :  { %v3748_v12 = vpop.eup %3747  ;;  %v966_v32 = vmul.f32 %v953_v2, %v946_v6  ;;  %v1043_v2 = vld [vmem:[#allocation7 + $0x128] sm:$0xff] }
 0x250   :  { %v3750_v33 = vpop.eup %3749  ;;  %v968_v15 = vmul.f32 %v961_v28, %v948_v7  ;;  %v947_v17 = vmul.f32 %v3748_v12, %v935_v8  ;;  %v1171_v5 = vld [vmem:[#allocation7 + $0x528] sm:$0xff]  ;;  %v3371_v60 = vcombine.high %v1039_v1, %v1043_v2  ;;  %v3370_v6 = vcombine.low %v1039_v1, %v1043_v2 }
 0x251   :  { %v949_v19 = vmul.f32 %v3750_v33, %v937_v11  ;;  %v986_v20 = vadd.f32 %v973_v29, %v966_v32  ;;  %v3499_v62 = vcombine.high %v1167_v4, %v1171_v5  ;;  %v1159_v28 = vld [vmem:[#allocation7 + $0x4c8] sm:$0xff]  ;;  %v3498_v29 = vcombine.low %v1167_v4, %v1171_v5 }
 0x252   :  { %v967_v13 = vmul.f32 %v957_v9, %v947_v17  ;;  %v988_v21 = vadd.f32 %v981_v10, %v968_v15  ;;  %v1163_v30 = vld [vmem:[#allocation7 + $0x4e8] sm:$0xff] }
 0x253   :  { %v969_v24 = vmul.f32 %v965_v16, %v949_v19  ;;  %v994_v25 = vmul.f32 0.2, %v986_v20  ;;  %vm990_vm3 = vcmp.ge.f32.partialorder %v986_v20, 0.0  ;;  %v3491_v8 = vcombine.high %v1159_v28, %v1163_v30  ;;  %v1023_v9 = vld [vmem:[#allocation7 + $0x88] sm:$0xff] }
 0x254   :  { %v987_v3 = vadd.f32 %v977_v18, %v967_v13  ;;  %v996_v26 = vmul.f32 0.2, %v988_v21  ;;  %vm992_vm4 = vcmp.ge.f32.partialorder %v988_v21, 0.0  ;;  %v1027_v10 = vld [vmem:[#allocation7 + $0xa8] sm:$0xff]  ;;  %v3490_v16 = vcombine.low %v1159_v28, %v1163_v30 }
 0x255   :  { %v989_v31 = vadd.f32 %v985_v38, %v969_v24  ;;  %v998_v35 = vsel %vm990_vm3, %v986_v20, %v994_v25  ;;  %v1151_v12 = vld [vmem:[#allocation7 + $0x488] sm:$0xff]  ;;  %v3355_v33 = vcombine.high %v1023_v9, %v1027_v10  ;;  %v3354_v20 = vcombine.low %v1023_v9, %v1027_v10 }
 0x256   :  { %vm991_vm5 = vcmp.ge.f32.partialorder %v987_v3, 0.0  ;;  %v995_v14 = vmul.f32 0.2, %v987_v3  ;;  %v1000_v39 = vsel %vm992_vm4, %v988_v21, %v996_v26  ;;  %v4051_v48 = vpack.c.bf16 %v998_v35, %v998_v35  ;;  %v1155_v32 = vld [vmem:[#allocation7 + $0x4a8] sm:$0xff] }
 0x257   :  { %vm993_vm6 = vcmp.ge.f32.partialorder %v989_v31, 0.0  ;;  %v997_v34 = vmul.f32 0.2, %v989_v31  ;;  %v4054_v49 = vpack.c.bf16 %v1000_v39, %v1000_v39  ;;  %v3483_v15 = vcombine.high %v1151_v12, %v1155_v32  ;;  %v1015_v17 = vld [vmem:[#allocation7 + $0x48] sm:$0xff] }
 0x258   :  { %v999_v40 = vsel %vm991_vm5, %v987_v3, %v995_v14  ;;  %v1019_v18 = vld [vmem:[#allocation7 + $0x68] sm:$0xff]  ;;  %v3482_v13 = vcombine.low %v1151_v12, %v1155_v32 }
 0x259   :  { %v4047_v27 = vpack.c.bf16 %v999_v40, %v999_v40  ;;  %v1001_v44 = vsel %vm993_vm6, %v989_v31, %v997_v34  ;;  %v1143_v19 = vld [vmem:[#allocation7 + $0x448] sm:$0xff]  ;;  %v3347_v21 = vcombine.high %v1015_v17, %v1019_v18  ;;  %v3346_v14 = vcombine.low %v1015_v17, %v1019_v18 }
 0x25a   :  { %v4049_v43 = vpack.c.bf16 %v1001_v44, %v1001_v44  ;;  %v1147_v38 = vld [vmem:[#allocation7 + $0x468] sm:$0xff] }
 0x25b   :  { %2606 = vmatprep.mubr.bf16.mxu1 %v4047_v27  ;;  %v3475_v24 = vcombine.high %v1143_v19, %v1147_v38  ;;  %v1007_v25 = vld [vmem:[#allocation7 + $0x8] sm:$0xff]  ;;  %v3474_v34 = vcombine.low %v1143_v19, %v1147_v38 }
 0x25c   :  { %2647 = vmatprep.mubr.bf16.mxu0 %v4049_v43  ;;  %2607 = vmatmul.mubr.bf16.vlgmr.msra.gmra.mxu1 %v4051_v48  ;;  %v1011_v3 = vld [vmem:[#allocation7 + $0x28] sm:$0xff] }
 0x25d   :  { %2648 = vmatmul.mubr.bf16.vlgmr.msra.gmra.mxu0 %v4054_v49  ;;  %2657 = vmatpush1.bf16.msra.mxu1 %v3394_v63  ;;  %v1031_v63 = vld [vmem:[#allocation7 + $0xc8] sm:$0xff]  ;;  %v3339_v35 = vcombine.high %v1007_v25, %v1011_v3  ;;  %v3338_v45 = vcombine.low %v1007_v25, %v1011_v3 }
 0x25e   :  { %2698 = vmatpush1.bf16.msra.mxu0 %v3522_v0  ;;  %2688 = vmatprep.mubr.bf16.mxu1 %v4047_v27  ;;  %v1035_v0 = vld [vmem:[#allocation7 + $0xe8] sm:$0xff] }
 0x25f   :  { %2729 = vmatprep.mubr.bf16.mxu0 %v4049_v43  ;;  %2658 = vmatprep.subr.bf16.mxu1 %v3387_v50  ;;  %v3363_v7 = vcombine.high %v1031_v63, %v1035_v0  ;;  %v3362_v11 = vcombine.low %v1031_v63, %v1035_v0  ;;  %v1135_v26 = vld [vmem:[#allocation7 + $0x408] sm:$0xff] }
 0x260   :  { %2699 = vmatprep.subr.bf16.mxu0 %v3515_v53  ;;  %v1139_v31 = vld [vmem:[#allocation7 + $0x428] sm:$0xff] }
 0x261   :  { %2659 = vmatpush1.bf16.msra.mxu1 %v3386_v55  ;;  %v3467_v40 = vcombine.high %v1135_v26, %v1139_v31  ;;  %v1127_v39 = vld [vmem:[#allocation7 + $0x3c8] sm:$0xff]  ;;  %v3466_v46 = vcombine.low %v1135_v26, %v1139_v31 }
 0x262   :  { %2700 = vmatpush1.bf16.msra.mxu0 %v3514_v56  ;;  %2660 = vmatprep.subr.bf16.mxu1 %v3379_v57  ;;  %v1259_v44 = vld [vmem:[#allocation7 + $0x7e8] sm:$0xff]  ;;  %v3459_v50 = vcombine.high %v1127_v39, %v1131_v41  ;;  %v3458_v55 = vcombine.low %v1127_v39, %v1131_v41 }
 0x263   :  { %2701 = vmatprep.subr.bf16.mxu0 %v3507_v61  ;;  %v3587_v51 = vcombine.high %v1255_v42, %v1259_v44  ;;  %v1123_v53 = vld [vmem:[#allocation7 + $0x3a8] sm:$0xff]  ;;  %v3586_v56 = vcombine.low %v1255_v42, %v1259_v44  ;;  %v3579_v61 = vcombine.high %v1247_v47, %v1251_v54 }
 0x264   :  { %v3451_v57 = vcombine.high %v1119_v52, %v1123_v53  ;;  %v1111_v1 = vld [vmem:[#allocation7 + $0x348] sm:$0xff] }
 0x265   :  { %2661 = vmatpush1.bf16.msra.mxu1 %v3378_v58  ;;  %v1115_v2 = vld [vmem:[#allocation7 + $0x368] sm:$0xff]  ;;  %v3450_v58 = vcombine.low %v1119_v52, %v1123_v53  ;;  %v1064_v52 = vld [vmem:[#allocation7 + $0x1d0] sm:$0xff] }
 0x266   :  { %2702 = vmatpush1.bf16.msra.mxu0 %v3506_v59  ;;  %2662 = vmatprep.subr.bf16.mxu1 %v3371_v60  ;;  %v1239_v4 = vld [vmem:[#allocation7 + $0x748] sm:$0xff]  ;;  %v3578_v59 = vcombine.low %v1247_v47, %v1251_v54  ;;  %v3443_v60 = vcombine.high %v1111_v1, %v1115_v2  ;;  %v1068_v53 = vld [vmem:[#allocation7 + $0x1f0] sm:$0xff] }
 0x267   :  { %2703 = vmatprep.subr.bf16.mxu0 %v3499_v62  ;;  %v1243_v5 = vld [vmem:[#allocation7 + $0x768] sm:$0xff]  ;;  %v1192_v47 = vld [vmem:[#allocation7 + $0x5d0] sm:$0xff] }
 0x268   :  { %v3571_v62 = vcombine.high %v1239_v4, %v1243_v5  ;;  %v1103_v63 = vld [vmem:[#allocation7 + $0x308] sm:$0xff]  ;;  %v1196_v54 = vld [vmem:[#allocation7 + $0x5f0] sm:$0xff] }
 0x269   :  { %2663 = vmatpush1.bf16.msra.mxu1 %v3370_v6  ;;  %v1107_v0 = vld [vmem:[#allocation7 + $0x328] sm:$0xff]  ;;  %v3442_v6 = vcombine.low %v1111_v1, %v1115_v2  ;;  %v1056_v1 = vld [vmem:[#allocation7 + $0x190] sm:$0xff] }
 0x26a   :  { %2704 = vmatpush1.bf16.msra.mxu0 %v3498_v29  ;;  %2664 = vmatprep.subr.bf16.mxu1 %v3363_v7  ;;  %v1231_v28 = vld [vmem:[#allocation7 + $0x708] sm:$0xff]  ;;  %v3570_v29 = vcombine.low %v1239_v4, %v1243_v5  ;;  %v3435_v7 = vcombine.high %v1103_v63, %v1107_v0  ;;  %v1060_v2 = vld [vmem:[#allocation7 + $0x1b0] sm:$0xff]  ;;  %v3396_v4 = vcombine.low %v1064_v52, %v1068_v53 }
 0x26b   :  { %2705 = vmatprep.subr.bf16.mxu0 %v3491_v8  ;;  %v1235_v30 = vld [vmem:[#allocation7 + $0x728] sm:$0xff]  ;;  %v1184_v5 = vld [vmem:[#allocation7 + $0x590] sm:$0xff] }
 0x26c   :  { %v3563_v8 = vcombine.high %v1231_v28, %v1235_v30  ;;  %v1095_v9 = vld [vmem:[#allocation7 + $0x2c8] sm:$0xff] }
 0x26d   :  { %2665 = vmatpush1.bf16.msra.mxu1 %v3362_v11  ;;  %v1099_v10 = vld [vmem:[#allocation7 + $0x2e8] sm:$0xff]  ;;  %v3434_v11 = vcombine.low %v1103_v63, %v1107_v0  ;;  %v1052_v63 = vld [vmem:[#allocation7 + $0x170] sm:$0xff] }
 0x26e   :  { %2706 = vmatpush1.bf16.msra.mxu0 %v3490_v16  ;;  %2666 = vmatprep.subr.bf16.mxu1 %v3355_v33  ;;  %v1223_v12 = vld [vmem:[#allocation7 + $0x6c8] sm:$0xff]  ;;  %v3562_v16 = vcombine.low %v1231_v28, %v1235_v30  ;;  %v3427_v33 = vcombine.high %v1095_v9, %v1099_v10  ;;  %v1176_v28 = vld [vmem:[#allocation7 + $0x550] sm:$0xff] }
 0x26f   :  { %2707 = vmatprep.subr.bf16.mxu0 %v3483_v15  ;;  %v1227_v32 = vld [vmem:[#allocation7 + $0x6e8] sm:$0xff]  ;;  %v1180_v30 = vld [vmem:[#allocation7 + $0x570] sm:$0xff] }
 0x270   :  { %v3555_v15 = vcombine.high %v1223_v12, %v1227_v32  ;;  %v1087_v17 = vld [vmem:[#allocation7 + $0x288] sm:$0xff] }
 0x271   :  { %2667 = vmatpush1.bf16.msra.mxu1 %v3354_v20  ;;  %v1091_v18 = vld [vmem:[#allocation7 + $0x2a8] sm:$0xff]  ;;  %v3426_v20 = vcombine.low %v1095_v9, %v1099_v10  ;;  %v1040_v9 = vld [vmem:[#allocation7 + $0x110] sm:$0xff] }
 0x272   :  { %2708 = vmatpush1.bf16.msra.mxu0 %v3482_v13  ;;  %2668 = vmatprep.subr.bf16.mxu1 %v3347_v21  ;;  %v1215_v19 = vld [vmem:[#allocation7 + $0x688] sm:$0xff]  ;;  %v3554_v13 = vcombine.low %v1223_v12, %v1227_v32  ;;  %v3419_v21 = vcombine.high %v1087_v17, %v1091_v18  ;;  %v1044_v10 = vld [vmem:[#allocation7 + $0x130] sm:$0xff] }
 0x273   :  { %2709 = vmatprep.subr.bf16.mxu0 %v3475_v24  ;;  %v1219_v38 = vld [vmem:[#allocation7 + $0x6a8] sm:$0xff]  ;;  %v1168_v12 = vld [vmem:[#allocation7 + $0x510] sm:$0xff] }
 0x274   :  { %v3547_v24 = vcombine.high %v1215_v19, %v1219_v38  ;;  %v1079_v25 = vld [vmem:[#allocation7 + $0x248] sm:$0xff]  ;;  %v1172_v32 = vld [vmem:[#allocation7 + $0x530] sm:$0xff] }
 0x275   :  { %2669 = vmatpush1.bf16.msra.mxu1 %v3346_v14  ;;  %v1083_v3 = vld [vmem:[#allocation7 + $0x268] sm:$0xff]  ;;  %v3418_v14 = vcombine.low %v1087_v17, %v1091_v18  ;;  %v1032_v17 = vld [vmem:[#allocation7 + $0xd0] sm:$0xff] }
 0x276   :  { %2710 = vmatpush1.bf16.msra.mxu0 %v3474_v34  ;;  %2670 = vmatprep.subr.bf16.mxu1 %v3339_v35  ;;  %v1207_v26 = vld [vmem:[#allocation7 + $0x648] sm:$0xff]  ;;  %v3546_v34 = vcombine.low %v1215_v19, %v1219_v38  ;;  %v3411_v35 = vcombine.high %v1079_v25, %v1083_v3  ;;  %v1036_v18 = vld [vmem:[#allocation7 + $0xf0] sm:$0xff] }
 0x277   :  { %2711 = vmatprep.subr.bf16.mxu0 %v3467_v40  ;;  %v1211_v31 = vld [vmem:[#allocation7 + $0x668] sm:$0xff]  ;;  %v1160_v19 = vld [vmem:[#allocation7 + $0x4d0] sm:$0xff] }
 0x278   :  { %v3539_v40 = vcombine.high %v1207_v26, %v1211_v31  ;;  %v1071_v39 = vld [vmem:[#allocation7 + $0x208] sm:$0xff]  ;;  %v1164_v38 = vld [vmem:[#allocation7 + $0x4f0] sm:$0xff] }
 0x279   :  { %2671 = vmatpush1.bf16.msra.mxu1 %v3338_v45  ;;  %v1075_v41 = vld [vmem:[#allocation7 + $0x228] sm:$0xff]  ;;  %v3410_v45 = vcombine.low %v1079_v25, %v1083_v3  ;;  %v1024_v25 = vld [vmem:[#allocation7 + $0x90] sm:$0xff] }
 0x27a   :  { %2712 = vmatpush1.bf16.msra.mxu0 %v3466_v46  ;;  %2672 = vmatprep.subr.bf16.mxu1 %v3459_v50  ;;  %v1199_v42 = vld [vmem:[#allocation7 + $0x608] sm:$0xff]  ;;  %v3538_v46 = vcombine.low %v1207_v26, %v1211_v31  ;;  %v3403_v50 = vcombine.high %v1071_v39, %v1075_v41  ;;  %v1028_v3 = vld [vmem:[#allocation7 + $0xb0] sm:$0xff] }
 0x27b   :  { %2713 = vmatprep.subr.bf16.mxu0 %v3587_v51  ;;  %v1203_v44 = vld [vmem:[#allocation7 + $0x628] sm:$0xff]  ;;  %v1152_v26 = vld [vmem:[#allocation7 + $0x490] sm:$0xff] }
 0x27c   :  { %v3531_v51 = vcombine.high %v1199_v42, %v1203_v44  ;;  %v1156_v31 = vld [vmem:[#allocation7 + $0x4b0] sm:$0xff] }
 0x27d   :  { %2673 = vmatpush2.bf16.msra.mxu1 %v3458_v55  ;;  %v3402_v55 = vcombine.low %v1071_v39, %v1075_v41  ;;  %v1016_v39 = vld [vmem:[#allocation7 + $0x50] sm:$0xff] }
 0x27e   :  { %2714 = vmatpush2.bf16.msra.mxu0 %v3586_v56  ;;  %2674 = vmatprep.subr.bf16.mxu1 %v3451_v57  ;;  %v3530_v56 = vcombine.low %v1199_v42, %v1203_v44  ;;  %v3397_v57 = vcombine.high %v1064_v52, %v1068_v53  ;;  %v1020_v41 = vld [vmem:[#allocation7 + $0x70] sm:$0xff] }
 0x27f   :  { %2715 = vmatprep.subr.bf16.mxu0 %v3579_v61  ;;  %v3525_v61 = vcombine.high %v1192_v47, %v1196_v54  ;;  %v1144_v42 = vld [vmem:[#allocation7 + $0x450] sm:$0xff] }
 0x280   :  { %v1148_v44 = vld [vmem:[#allocation7 + $0x470] sm:$0xff] }
 0x281   :  { %2675 = vmatpush2.bf16.msra.mxu1 %v3450_v58  ;;  %v1188_v58 = vld [vmem:[#allocation7 + $0x5b0] sm:$0xff] }
 0x282   :  { %2716 = vmatpush2.bf16.msra.mxu0 %v3578_v59  ;;  %2676 = vmatprep.subr.bf16.mxu1 %v3443_v60  ;;  %v3524_v59 = vcombine.low %v1192_v47, %v1196_v54  ;;  %v3389_v60 = vcombine.high %v1056_v1, %v1060_v2  ;;  %v3517_v0 = vcombine.high %v1184_v5, %v1188_v58  ;;  %v1008_v52 = vld [vmem:[#allocation7 + $0x10] sm:$0xff] }
 0x283   :  { %2717 = vmatprep.subr.bf16.mxu0 %v3571_v62  ;;  %v1048_v62 = vld [vmem:[#allocation7 + $0x150] sm:$0xff] }
 0x284   :  { %v1012_v53 = vld [vmem:[#allocation7 + $0x30] sm:$0xff] }
 0x285   :  { %2677 = vmatpush2.bf16.msra.mxu1 %v3442_v6  ;;  %v3388_v6 = vcombine.low %v1056_v1, %v1060_v2  ;;  %v1136_v47 = vld [vmem:[#allocation7 + $0x410] sm:$0xff] }
 0x286   :  { %2718 = vmatpush2.bf16.msra.mxu0 %v3570_v29  ;;  %2678 = vmatprep.subr.bf16.mxu1 %v3435_v7  ;;  %v3516_v29 = vcombine.low %v1184_v5, %v1188_v58  ;;  %v3381_v7 = vcombine.high %v1048_v62, %v1052_v63  ;;  %v1140_v54 = vld [vmem:[#allocation7 + $0x430] sm:$0xff]  ;;  %v3340_v58 = vcombine.low %v1008_v52, %v1012_v53 }
 0x287   :  { %2719 = vmatprep.subr.bf16.mxu0 %v3563_v8  ;;  %v3509_v8 = vcombine.high %v1176_v28, %v1180_v30  ;;  %v1128_v1 = vld [vmem:[#allocation7 + $0x3d0] sm:$0xff] }
 0x288   :  { %v1132_v2 = vld [vmem:[#allocation7 + $0x3f0] sm:$0xff] }
 0x289   :  { %2679 = vmatpush2.bf16.msra.mxu1 %v3434_v11  ;;  %v3380_v11 = vcombine.low %v1048_v62, %v1052_v63  ;;  %v1260_v5 = vld [vmem:[#allocation7 + $0x7f0] sm:$0xff] }
 0x28a   :  { %2720 = vmatpush2.bf16.msra.mxu0 %v3562_v16  ;;  %2680 = vmatprep.subr.bf16.mxu1 %v3427_v33  ;;  %v3508_v16 = vcombine.low %v1176_v28, %v1180_v30  ;;  %v3373_v33 = vcombine.high %v1040_v9, %v1044_v10  ;;  %v1120_v63 = vld [vmem:[#allocation7 + $0x390] sm:$0xff] }
 0x28b   :  { %2721 = vmatprep.subr.bf16.mxu0 %v3555_v15  ;;  %v3501_v15 = vcombine.high %v1168_v12, %v1172_v32  ;;  %v1248_v28 = vld [vmem:[#allocation7 + $0x790] sm:$0xff] }
 0x28c   :  { %v1252_v30 = vld [vmem:[#allocation7 + $0x7b0] sm:$0xff] }
 0x28d   :  { %2681 = vmatpush2.bf16.msra.mxu1 %v3426_v20  ;;  %v3372_v20 = vcombine.low %v1040_v9, %v1044_v10  ;;  %v1112_v9 = vld [vmem:[#allocation7 + $0x350] sm:$0xff] }
 0x28e   :  { %2722 = vmatpush2.bf16.msra.mxu0 %v3554_v13  ;;  %2682 = vmatprep.subr.bf16.mxu1 %v3419_v21  ;;  %v3500_v13 = vcombine.low %v1168_v12, %v1172_v32  ;;  %v3365_v21 = vcombine.high %v1032_v17, %v1036_v18  ;;  %v1116_v10 = vld [vmem:[#allocation7 + $0x370] sm:$0xff] }
 0x28f   :  { %2723 = vmatprep.subr.bf16.mxu0 %v3547_v24  ;;  %v3493_v24 = vcombine.high %v1160_v19, %v1164_v38  ;;  %v1240_v12 = vld [vmem:[#allocation7 + $0x750] sm:$0xff] }
 0x290   :  { %v1244_v32 = vld [vmem:[#allocation7 + $0x770] sm:$0xff] }
 0x291   :  { %2683 = vmatpush2.bf16.msra.mxu1 %v3418_v14  ;;  %v3364_v14 = vcombine.low %v1032_v17, %v1036_v18  ;;  %v1104_v17 = vld [vmem:[#allocation7 + $0x310] sm:$0xff] }
 0x292   :  { %2724 = vmatpush2.bf16.msra.mxu0 %v3546_v34  ;;  %2684 = vmatprep.subr.bf16.mxu1 %v3411_v35  ;;  %v3492_v34 = vcombine.low %v1160_v19, %v1164_v38  ;;  %v3357_v35 = vcombine.high %v1024_v25, %v1028_v3  ;;  %v1108_v18 = vld [vmem:[#allocation7 + $0x330] sm:$0xff] }
 0x293   :  { %2725 = vmatprep.subr.bf16.mxu0 %v3539_v40  ;;  %v3485_v40 = vcombine.high %v1152_v26, %v1156_v31  ;;  %v1232_v19 = vld [vmem:[#allocation7 + $0x710] sm:$0xff] }
 0x294   :  { %v1236_v38 = vld [vmem:[#allocation7 + $0x730] sm:$0xff] }
 0x295   :  { %2685 = vmatpush2.bf16.msra.mxu1 %v3410_v45  ;;  %v3356_v45 = vcombine.low %v1024_v25, %v1028_v3  ;;  %v1096_v25 = vld [vmem:[#allocation7 + $0x2d0] sm:$0xff] }
 0x296   :  { %2726 = vmatpush2.bf16.msra.mxu0 %v3538_v46  ;;  %2686 = vmatprep.subr.bf16.mxu1 %v3403_v50  ;;  %v3484_v46 = vcombine.low %v1152_v26, %v1156_v31  ;;  %v3349_v50 = vcombine.high %v1016_v39, %v1020_v41  ;;  %v1100_v3 = vld [vmem:[#allocation7 + $0x2f0] sm:$0xff] }
 0x297   :  { %2727 = vmatprep.subr.bf16.mxu0 %v3531_v51  ;;  %v3477_v51 = vcombine.high %v1144_v42, %v1148_v44  ;;  %v1224_v26 = vld [vmem:[#allocation7 + $0x6d0] sm:$0xff] }
 0x298   :  { %v1228_v31 = vld [vmem:[#allocation7 + $0x6f0] sm:$0xff] }
 0x299   :  { %2687 = vmatpush2.bf16.msra.mxu1 %v3402_v55  ;;  %v3348_v55 = vcombine.low %v1016_v39, %v1020_v41  ;;  %v1088_v39 = vld [vmem:[#allocation7 + $0x290] sm:$0xff] }
 0x29a   :  { %2728 = vmatpush2.bf16.msra.mxu0 %v3530_v56  ;;  %2738 = vmatprep.subr.bf16.mxu1 %v3397_v57  ;;  %v3476_v56 = vcombine.low %v1144_v42, %v1148_v44  ;;  %v3341_v57 = vcombine.high %v1008_v52, %v1012_v53  ;;  %v1092_v41 = vld [vmem:[#allocation7 + $0x2b0] sm:$0xff] }
 0x29b   :  { %2779 = vmatprep.subr.bf16.mxu0 %v3525_v61  ;;  %v3469_v61 = vcombine.high %v1136_v47, %v1140_v54  ;;  %v1216_v42 = vld [vmem:[#allocation7 + $0x690] sm:$0xff] }
 0x29c   :  { %2689 = vmatmul.mubr.bf16.vlgmr.msra.gmra.mxu1 %v4051_v48  ;;  %v1220_v44 = vld [vmem:[#allocation7 + $0x6b0] sm:$0xff] }
 0x29d   :  { %2730 = vmatmul.mubr.bf16.vlgmr.msra.gmra.mxu0 %v4054_v49  ;;  %2739 = vmatpush1.bf16.msra.mxu1 %v3396_v4  ;;  %v1256_v4 = vld [vmem:[#allocation7 + $0x7d0] sm:$0xff] }
 0x29e   :  { %2770 = vmatprep.mubr.bf16.mxu1 %v4047_v27  ;;  %2780 = vmatpush1.bf16.msra.mxu0 %v3524_v59  ;;  %v3468_v59 = vcombine.low %v1136_v47, %v1140_v54  ;;  %v3589_v62 = vcombine.high %v1256_v4, %v1260_v5  ;;  %v1080_v52 = vld [vmem:[#allocation7 + $0x250] sm:$0xff] }
 0x29f   :  { %2811 = vmatprep.mubr.bf16.mxu0 %v4049_v43  ;;  %2740 = vmatprep.subr.bf16.mxu1 %v3389_v60  ;;  %v3461_v60 = vcombine.high %v1128_v1, %v1132_v2  ;;  %v1084_v53 = vld [vmem:[#allocation7 + $0x270] sm:$0xff] }
 0x2a0   :  { %2781 = vmatprep.subr.bf16.mxu0 %v3517_v0  ;;  %v1124_v0 = vld [vmem:[#allocation7 + $0x3b0] sm:$0xff] }
 0x2a1   :  { %2741 = vmatpush1.bf16.msra.mxu1 %v3388_v6  ;;  %v3460_v6 = vcombine.low %v1128_v1, %v1132_v2  ;;  %v1208_v47 = vld [vmem:[#allocation7 + $0x650] sm:$0xff] }
 0x2a2   :  { %2782 = vmatpush1.bf16.msra.mxu0 %v3516_v29  ;;  %2742 = vmatprep.subr.bf16.mxu1 %v3381_v7  ;;  %v3588_v29 = vcombine.low %v1256_v4, %v1260_v5  ;;  %v3453_v7 = vcombine.high %v1120_v63, %v1124_v0  ;;  %v1212_v54 = vld [vmem:[#allocation7 + $0x670] sm:$0xff] }
 0x2a3   :  { %2783 = vmatprep.subr.bf16.mxu0 %v3509_v8  ;;  %v3581_v8 = vcombine.high %v1248_v28, %v1252_v30  ;;  %v1072_v1 = vld [vmem:[#allocation7 + $0x210] sm:$0xff] }
 0x2a4   :  { %v1076_v2 = vld [vmem:[#allocation7 + $0x230] sm:$0xff] }
 0x2a5   :  { %2743 = vmatpush1.bf16.msra.mxu1 %v3380_v11  ;;  %v3452_v11 = vcombine.low %v1120_v63, %v1124_v0  ;;  %v1200_v4 = vld [vmem:[#allocation7 + $0x610] sm:$0xff]  ;;  %v1065_v63 = vld [vmem:[#allocation7 + $0x1d8] sm:$0xff] }
 0x2a6   :  { %2784 = vmatpush1.bf16.msra.mxu0 %v3508_v16  ;;  %2744 = vmatprep.subr.bf16.mxu1 %v3373_v33  ;;  %v3580_v16 = vcombine.low %v1248_v28, %v1252_v30  ;;  %v3445_v33 = vcombine.high %v1112_v9, %v1116_v10  ;;  %v1204_v5 = vld [vmem:[#allocation7 + $0x630] sm:$0xff]  ;;  %v1069_v0 = vld [vmem:[#allocation7 + $0x1f8] sm:$0xff] }
 0x2a7   :  { %2785 = vmatprep.subr.bf16.mxu0 %v3501_v15  ;;  %v3573_v15 = vcombine.high %v1240_v12, %v1244_v32  ;;  %v1193_v28 = vld [vmem:[#allocation7 + $0x5d8] sm:$0xff] }
 0x2a8   :  { %v1197_v30 = vld [vmem:[#allocation7 + $0x5f8] sm:$0xff] }
 0x2a9   :  { %2745 = vmatpush1.bf16.msra.mxu1 %v3372_v20  ;;  %v3444_v20 = vcombine.low %v1112_v9, %v1116_v10  ;;  %v1057_v9 = vld [vmem:[#allocation7 + $0x198] sm:$0xff] }
 0x2aa   :  { %2786 = vmatpush1.bf16.msra.mxu0 %v3500_v13  ;;  %2746 = vmatprep.subr.bf16.mxu1 %v3365_v21  ;;  %v3572_v13 = vcombine.low %v1240_v12, %v1244_v32  ;;  %v3437_v21 = vcombine.high %v1104_v17, %v1108_v18  ;;  %v1061_v10 = vld [vmem:[#allocation7 + $0x1b8] sm:$0xff]  ;;  %v3398_v12 = vcombine.low %v1065_v63, %v1069_v0 }
 0x2ab   :  { %2787 = vmatprep.subr.bf16.mxu0 %v3493_v24  ;;  %v3565_v24 = vcombine.high %v1232_v19, %v1236_v38  ;;  %v1185_v32 = vld [vmem:[#allocation7 + $0x598] sm:$0xff] }
 0x2ad   :  { %2747 = vmatpush1.bf16.msra.mxu1 %v3364_v14  ;;  %v3436_v14 = vcombine.low %v1104_v17, %v1108_v18  ;;  %v1053_v17 = vld [vmem:[#allocation7 + $0x178] sm:$0xff] }
 0x2ae   :  { %2788 = vmatpush1.bf16.msra.mxu0 %v3492_v34  ;;  %2748 = vmatprep.subr.bf16.mxu1 %v3357_v35  ;;  %v3564_v34 = vcombine.low %v1232_v19, %v1236_v38  ;;  %v3429_v35 = vcombine.high %v1096_v25, %v1100_v3  ;;  %v1177_v19 = vld [vmem:[#allocation7 + $0x558] sm:$0xff] }
 0x2af   :  { %2789 = vmatprep.subr.bf16.mxu0 %v3485_v40  ;;  %v3557_v40 = vcombine.high %v1224_v26, %v1228_v31  ;;  %v1181_v38 = vld [vmem:[#allocation7 + $0x578] sm:$0xff] }
 0x2b1   :  { %2749 = vmatpush1.bf16.msra.mxu1 %v3356_v45  ;;  %v3428_v45 = vcombine.low %v1096_v25, %v1100_v3  ;;  %v1041_v25 = vld [vmem:[#allocation7 + $0x118] sm:$0xff] }
 0x2b2   :  { %2790 = vmatpush1.bf16.msra.mxu0 %v3484_v46  ;;  %2750 = vmatprep.subr.bf16.mxu1 %v3349_v50  ;;  %v3556_v46 = vcombine.low %v1224_v26, %v1228_v31  ;;  %v3421_v50 = vcombine.high %v1088_v39, %v1092_v41  ;;  %v1045_v3 = vld [vmem:[#allocation7 + $0x138] sm:$0xff] }
 0x2b3   :  { %2791 = vmatprep.subr.bf16.mxu0 %v3477_v51  ;;  %v3549_v51 = vcombine.high %v1216_v42, %v1220_v44  ;;  %v1169_v26 = vld [vmem:[#allocation7 + $0x518] sm:$0xff] }
 0x2b4   :  { %v1173_v31 = vld [vmem:[#allocation7 + $0x538] sm:$0xff] }
 0x2b5   :  { %2751 = vmatpush1.bf16.msra.mxu1 %v3348_v55  ;;  %v3420_v55 = vcombine.low %v1088_v39, %v1092_v41  ;;  %v1037_v39 = vld [vmem:[#allocation7 + $0xf8] sm:$0xff] }
 0x2b6   :  { %2792 = vmatpush1.bf16.msra.mxu0 %v3476_v56  ;;  %2752 = vmatprep.subr.bf16.mxu1 %v3341_v57  ;;  %v3548_v56 = vcombine.low %v1216_v42, %v1220_v44  ;;  %v3413_v57 = vcombine.high %v1080_v52, %v1084_v53  ;;  %v1161_v41 = vld [vmem:[#allocation7 + $0x4d8] sm:$0xff]  ;;  %v3502_v44 = vcombine.low %v1169_v26, %v1173_v31 }
 0x2b7   :  { %2793 = vmatprep.subr.bf16.mxu0 %v3469_v61  ;;  %v3541_v61 = vcombine.high %v1208_v47, %v1212_v54  ;;  %v1165_v42 = vld [vmem:[#allocation7 + $0x4f8] sm:$0xff] }
 0x2b9   :  { %2753 = vmatpush1.bf16.msra.mxu1 %v3340_v58  ;;  %v3412_v58 = vcombine.low %v1080_v52, %v1084_v53  ;;  %v1153_v52 = vld [vmem:[#allocation7 + $0x498] sm:$0xff] }
 0x2ba   :  { %2794 = vmatpush1.bf16.msra.mxu0 %v3468_v59  ;;  %2754 = vmatprep.subr.bf16.mxu1 %v3461_v60  ;;  %v3540_v59 = vcombine.low %v1208_v47, %v1212_v54  ;;  %v3405_v60 = vcombine.high %v1072_v1, %v1076_v2  ;;  %v1157_v53 = vld [vmem:[#allocation7 + $0x4b8] sm:$0xff]  ;;  %v3494_v54 = vcombine.low %v1161_v41, %v1165_v42 }
 0x2bb   :  { %2795 = vmatprep.subr.bf16.mxu0 %v3589_v62  ;;  %v3533_v62 = vcombine.high %v1200_v4, %v1204_v5 }
 0x2bd   :  { %2755 = vmatpush2.bf16.msra.mxu1 %v3460_v6  ;;  %v3404_v6 = vcombine.low %v1072_v1, %v1076_v2  ;;  %v1145_v1 = vld [vmem:[#allocation7 + $0x458] sm:$0xff] }
 0x2be   :  { %2796 = vmatpush2.bf16.msra.mxu0 %v3588_v29  ;;  %2756 = vmatprep.subr.bf16.mxu1 %v3453_v7  ;;  %v3532_v29 = vcombine.low %v1200_v4, %v1204_v5  ;;  %v3399_v7 = vcombine.high %v1065_v63, %v1069_v0  ;;  %v1149_v2 = vld [vmem:[#allocation7 + $0x478] sm:$0xff]  ;;  %v3486_v5 = vcombine.low %v1153_v52, %v1157_v53 }
 0x2bf   :  { %2797 = vmatprep.subr.bf16.mxu0 %v3581_v8  ;;  %v3527_v8 = vcombine.high %v1193_v28, %v1197_v30  ;;  %v1137_v63 = vld [vmem:[#allocation7 + $0x418] sm:$0xff] }
 0x2c0   :  { %v1141_v0 = vld [vmem:[#allocation7 + $0x438] sm:$0xff] }
 0x2c1   :  { %2757 = vmatpush2.bf16.msra.mxu1 %v3452_v11  ;;  %v1189_v11 = vld [vmem:[#allocation7 + $0x5b8] sm:$0xff] }
 0x2c2   :  { %2798 = vmatpush2.bf16.msra.mxu0 %v3580_v16  ;;  %2758 = vmatprep.subr.bf16.mxu1 %v3445_v33  ;;  %v3526_v16 = vcombine.low %v1193_v28, %v1197_v30  ;;  %v3391_v33 = vcombine.high %v1057_v9, %v1061_v10  ;;  %v3519_v18 = vcombine.high %v1185_v32, %v1189_v11 }
 0x2c3   :  { %2799 = vmatprep.subr.bf16.mxu0 %v3573_v15  ;;  %v1049_v15 = vld [vmem:[#allocation7 + $0x158] sm:$0xff]  ;;  %v3478_v30 = vcombine.low %v1145_v1, %v1149_v2 }
 0x2c5   :  { %2759 = vmatpush2.bf16.msra.mxu1 %v3444_v20  ;;  %v3390_v20 = vcombine.low %v1057_v9, %v1061_v10  ;;  %v1257_v9 = vld [vmem:[#allocation7 + $0x7d8] sm:$0xff] }
 0x2c6   :  { %2800 = vmatpush2.bf16.msra.mxu0 %v3572_v13  ;;  %2760 = vmatprep.subr.bf16.mxu1 %v3437_v21  ;;  %v3518_v13 = vcombine.low %v1185_v32, %v1189_v11  ;;  %v3383_v21 = vcombine.high %v1049_v15, %v1053_v17  ;;  %v1261_v10 = vld [vmem:[#allocation7 + $0x7f8] sm:$0xff]  ;;  %v3470_v32 = vcombine.low %v1137_v63, %v1141_v0 }
 0x2c7   :  { %2801 = vmatprep.subr.bf16.mxu0 %v3565_v24  ;;  %v3511_v24 = vcombine.high %v1177_v19, %v1181_v38 }
 0x2c9   :  { %2761 = vmatpush2.bf16.msra.mxu1 %v3436_v14  ;;  %v3382_v14 = vcombine.low %v1049_v15, %v1053_v17  ;;  %v1125_v15 = vld [vmem:[#allocation7 + $0x3b8] sm:$0xff] }
 0x2ca   :  { %2802 = vmatpush2.bf16.msra.mxu0 %v3564_v34  ;;  %2762 = vmatprep.subr.bf16.mxu1 %v3429_v35  ;;  %v3510_v34 = vcombine.low %v1177_v19, %v1181_v38  ;;  %v3375_v35 = vcombine.high %v1041_v25, %v1045_v3  ;;  %v1249_v17 = vld [vmem:[#allocation7 + $0x798] sm:$0xff]  ;;  %v3590_v38 = vcombine.low %v1257_v9, %v1261_v10 }
 0x2cb   :  { %2803 = vmatprep.subr.bf16.mxu0 %v3557_v40  ;;  %v1033_v40 = vld [vmem:[#allocation7 + $0xd8] sm:$0xff] }
 0x2cc   :  { %v3366_v47 = vcombine.low %v1033_v40, %v1037_v39 }
 0x2cd   :  { %2763 = vmatpush2.bf16.msra.mxu1 %v3428_v45  ;;  %v3367_v45 = vcombine.high %v1033_v40, %v1037_v39  ;;  %v1233_v40 = vld [vmem:[#allocation7 + $0x718] sm:$0xff] }
 0x2ce   :  { %2804 = vmatpush2.bf16.msra.mxu0 %v3556_v46  ;;  %2764 = vmatprep.subr.bf16.mxu1 %v3421_v50  ;;  %v3495_v46 = vcombine.high %v1161_v41, %v1165_v42  ;;  %v1025_v50 = vld [vmem:[#allocation7 + $0x98] sm:$0xff] }
 0x2cf   :  { %2805 = vmatprep.subr.bf16.mxu0 %v3549_v51  ;;  %v1029_v51 = vld [vmem:[#allocation7 + $0xb8] sm:$0xff] }
 0x2d0   :  { %v3358_v4 = vcombine.low %v1025_v50, %v1029_v51  ;;  %v1237_v39 = vld [vmem:[#allocation7 + $0x738] sm:$0xff] }
 0x2d1   :  { %2765 = vmatpush2.bf16.msra.mxu1 %v3420_v55  ;;  %v3359_v55 = vcombine.high %v1025_v50, %v1029_v51  ;;  %v1225_v50 = vld [vmem:[#allocation7 + $0x6d8] sm:$0xff] }
 0x2d2   :  { %2806 = vmatpush2.bf16.msra.mxu0 %v3548_v56  ;;  %2766 = vmatprep.subr.bf16.mxu1 %v3413_v57  ;;  %v3487_v56 = vcombine.high %v1153_v52, %v1157_v53  ;;  %v1017_v57 = vld [vmem:[#allocation7 + $0x58] sm:$0xff]  ;;  %v3566_v53 = vcombine.low %v1233_v40, %v1237_v39 }
 0x2d3   :  { %2807 = vmatprep.subr.bf16.mxu0 %v3541_v61  ;;  %v1021_v61 = vld [vmem:[#allocation7 + $0x78] sm:$0xff] }
 0x2d4   :  { %v3350_v28 = vcombine.low %v1017_v57, %v1021_v61  ;;  %v1229_v51 = vld [vmem:[#allocation7 + $0x6f8] sm:$0xff] }
 0x2d5   :  { %2767 = vmatpush2.bf16.msra.mxu1 %v3412_v58  ;;  %v3351_v58 = vcombine.high %v1017_v57, %v1021_v61  ;;  %v1217_v57 = vld [vmem:[#allocation7 + $0x698] sm:$0xff] }
 0x2d6   :  { %2808 = vmatpush2.bf16.msra.mxu0 %v3540_v59  ;;  %2768 = vmatprep.subr.bf16.mxu1 %v3405_v60  ;;  %v3479_v59 = vcombine.high %v1145_v1, %v1149_v2  ;;  %v1009_v60 = vld [vmem:[#allocation7 + $0x18] sm:$0xff]  ;;  %v3558_v2 = vcombine.low %v1225_v50, %v1229_v51 }
 0x2d7   :  { %2809 = vmatprep.subr.bf16.mxu0 %v3533_v62  ;;  %v1013_v62 = vld [vmem:[#allocation7 + $0x38] sm:$0xff] }
 0x2d8   :  { %v1221_v61 = vld [vmem:[#allocation7 + $0x6b8] sm:$0xff] }
 0x2d9   :  { %2769 = vmatpush2.bf16.msra.mxu1 %v3404_v6  ;;  %v3343_v6 = vcombine.high %v1009_v60, %v1013_v62 }
 0x2da   :  { %2810 = vmatpush2.bf16.msra.mxu0 %v3532_v29  ;;  %2820 = vmatprep.subr.bf16.mxu1 %v3399_v7  ;;  %v3471_v29 = vcombine.high %v1137_v63, %v1141_v0  ;;  %v1129_v7 = vld [vmem:[#allocation7 + $0x3d8] sm:$0xff]  ;;  %v3550_v0 = vcombine.low %v1217_v57, %v1221_v61 }
 0x2db   :  { %2861 = vmatprep.subr.bf16.mxu0 %v3527_v8  ;;  %v1133_v8 = vld [vmem:[#allocation7 + $0x3f8] sm:$0xff] }
 0x2dc   :  { %2771 = vmatmul.mubr.bf16.vlgmr.msra.gmra.mxu1 %v4051_v48  ;;  %v3463_v11 = vcombine.high %v1129_v7, %v1133_v8  ;;  %v3462_v19 = vcombine.low %v1129_v7, %v1133_v8  ;;  %v1201_v7 = vld [vmem:[#allocation7 + $0x618] sm:$0xff] }
 0x2dd   :  { %2812 = vmatmul.mubr.bf16.vlgmr.msra.gmra.mxu0 %v4054_v49  ;;  %2821 = vmatpush1.bf16.msra.mxu1 %v3398_v12  ;;  %v3342_v12 = vcombine.low %v1009_v60, %v1013_v62  ;;  %v1209_v60 = vld [vmem:[#allocation7 + $0x658] sm:$0xff] }
 0x2de   :  { %2852 = vmatprep.mubr.bf16.mxu1 %v4047_v27  ;;  %2862 = vmatpush1.bf16.msra.mxu0 %v3526_v16  ;;  %v3503_v27 = vcombine.high %v1169_v26, %v1173_v31  ;;  %v3591_v16 = vcombine.high %v1257_v9, %v1261_v10  ;;  %v1213_v62 = vld [vmem:[#allocation7 + $0x678] sm:$0xff] }
 0x2df   :  { %2893 = vmatprep.mubr.bf16.mxu0 %v4049_v43  ;;  %2822 = vmatprep.subr.bf16.mxu1 %v3391_v33  ;;  %v3374_v43 = vcombine.low %v1041_v25, %v1045_v3  ;;  %v1121_v33 = vld [vmem:[#allocation7 + $0x398] sm:$0xff]  ;;  %v3542_v10 = vcombine.low %v1209_v60, %v1213_v62 }
 0x2e0   :  { %2863 = vmatprep.subr.bf16.mxu0 %v3519_v18  ;;  %v1253_v18 = vld [vmem:[#allocation7 + $0x7b8] sm:$0xff]  ;;  %v3454_v26 = vcombine.low %v1121_v33, %v1125_v15 }
 0x2e1   :  { %2823 = vmatpush1.bf16.msra.mxu1 %v3390_v20  ;;  %v3455_v20 = vcombine.high %v1121_v33, %v1125_v15  ;;  %v1241_v25 = vld [vmem:[#allocation7 + $0x758] sm:$0xff]  ;;  %v3582_v31 = vcombine.low %v1249_v17, %v1253_v18  ;;  %v4078_v15 = vld [vmem:[#allocation9] sm:$0xff] }
 0x2e2   :  { %2864 = vmatpush1.bf16.msra.mxu0 %v3518_v13  ;;  %2824 = vmatprep.subr.bf16.mxu1 %v3383_v21  ;;  %v3583_v13 = vcombine.high %v1249_v17, %v1253_v18  ;;  %v1113_v21 = vld [vmem:[#allocation7 + $0x358] sm:$0xff]  ;;  %v4082_v18 = vld [vmem:[#allocation9 + $0x8] sm:$0xff] }
 0x2e3   :  { %2865 = vmatprep.subr.bf16.mxu0 %v3511_v24  ;;  %v1117_v24 = vld [vmem:[#allocation7 + $0x378] sm:$0xff] }
 0x2e4   :  { %v1245_v3 = vld [vmem:[#allocation7 + $0x778] sm:$0xff]  ;;  %v3446_v41 = vcombine.low %v1113_v21, %v1117_v24 }
 0x2e5   :  { %2825 = vmatpush1.bf16.msra.mxu1 %v3382_v14  ;;  %v3447_v14 = vcombine.high %v1113_v21, %v1117_v24  ;;  %v3574_v42 = vcombine.low %v1241_v25, %v1245_v3  ;;  %v1205_v8 = vld [vmem:[#allocation7 + $0x638] sm:$0xff] }
 0x2e6   :  { %2866 = vmatpush1.bf16.msra.mxu0 %v3510_v34  ;;  %2826 = vmatprep.subr.bf16.mxu1 %v3375_v35  ;;  %v3575_v34 = vcombine.high %v1241_v25, %v1245_v3  ;;  %v1105_v35 = vld [vmem:[#allocation7 + $0x318] sm:$0xff]  ;;  %v3534_v33 = vcombine.low %v1201_v7, %v1205_v8 }
 0x2e7   :  { %2867 = vmatprep.subr.bf16.mxu0 %v3503_v27  ;;  %v1109_v27 = vld [vmem:[#allocation7 + $0x338] sm:$0xff] }
 0x2e8   :  { %v3438_v52 = vcombine.low %v1105_v35, %v1109_v27 }
 0x2e9   :  { %2827 = vmatpush1.bf16.msra.mxu1 %v3374_v43  ;;  %v3439_v43 = vcombine.high %v1105_v35, %v1109_v27 }
 0x2ea   :  { %2868 = vmatpush1.bf16.msra.mxu0 %v3502_v44  ;;  %2828 = vmatprep.subr.bf16.mxu1 %v3367_v45  ;;  %v3567_v44 = vcombine.high %v1233_v40, %v1237_v39  ;;  %v1097_v45 = vld [vmem:[#allocation7 + $0x2d8] sm:$0xff] }
 0x2eb   :  { %2869 = vmatprep.subr.bf16.mxu0 %v3495_v46  ;;  %v1101_v46 = vld [vmem:[#allocation7 + $0x2f8] sm:$0xff] }
 0x2ec   :  { %v3430_v1 = vcombine.low %v1097_v45, %v1101_v46 }
 0x2ed   :  { %2829 = vmatpush1.bf16.msra.mxu1 %v3366_v47  ;;  %v3431_v47 = vcombine.high %v1097_v45, %v1101_v46 }
 0x2ee   :  { %2870 = vmatpush1.bf16.msra.mxu0 %v3494_v54  ;;  %2830 = vmatprep.subr.bf16.mxu1 %v3359_v55  ;;  %v3559_v54 = vcombine.high %v1225_v50, %v1229_v51  ;;  %v1089_v55 = vld [vmem:[#allocation7 + $0x298] sm:$0xff] }
 0x2ef   :  { %2871 = vmatprep.subr.bf16.mxu0 %v3487_v56  ;;  %v1093_v56 = vld [vmem:[#allocation7 + $0x2b8] sm:$0xff] }
 0x2f0   :  { %v3422_v63 = vcombine.low %v1089_v55, %v1093_v56 }
 0x2f1   :  { %2831 = vmatpush1.bf16.msra.mxu1 %v3358_v4  ;;  %v3423_v4 = vcombine.high %v1089_v55, %v1093_v56 }
 0x2f2   :  { %2872 = vmatpush1.bf16.msra.mxu0 %v3486_v5  ;;  %2832 = vmatprep.subr.bf16.mxu1 %v3351_v58  ;;  %v3551_v5 = vcombine.high %v1217_v57, %v1221_v61  ;;  %v1081_v58 = vld [vmem:[#allocation7 + $0x258] sm:$0xff] }
 0x2f3   :  { %2873 = vmatprep.subr.bf16.mxu0 %v3479_v59  ;;  %v1085_v59 = vld [vmem:[#allocation7 + $0x278] sm:$0xff] }
 0x2f4   :  { %v3414_v9 = vcombine.low %v1081_v58, %v1085_v59 }
 0x2f5   :  { %2833 = vmatpush1.bf16.msra.mxu1 %v3350_v28  ;;  %v3415_v28 = vcombine.high %v1081_v58, %v1085_v59 }
 0x2f6   :  { %2874 = vmatpush1.bf16.msra.mxu0 %v3478_v30  ;;  %2834 = vmatprep.subr.bf16.mxu1 %v3343_v6  ;;  %v3543_v30 = vcombine.high %v1209_v60, %v1213_v62  ;;  %v1073_v6 = vld [vmem:[#allocation7 + $0x218] sm:$0xff] }
 0x2f7   :  { %2875 = vmatprep.subr.bf16.mxu0 %v3471_v29  ;;  %v1077_v29 = vld [vmem:[#allocation7 + $0x238] sm:$0xff] }
 0x2f9   :  { %2835 = vmatpush1.bf16.msra.mxu1 %v3342_v12  ;;  %v3407_v12 = vcombine.high %v1073_v6, %v1077_v29 }
 0x2fa   :  { %2876 = vmatpush1.bf16.msra.mxu0 %v3470_v32  ;;  %2836 = vmatprep.subr.bf16.mxu1 %v3463_v11  ;;  %v3535_v32 = vcombine.high %v1201_v7, %v1205_v8  ;;  %v3406_v11 = vcombine.low %v1073_v6, %v1077_v29 }
 0x2fb   :  { %2877 = vmatprep.subr.bf16.mxu0 %v3591_v16  ;;  %v4076_v16 = vsub.s32 6, %v3951_v36 }
 0x2fd   :  { %2837 = vmatpush2.bf16.msra.mxu1 %v3462_v19  ;;  %v1265_v17 = vrot.slane %v4078_v15, %v4076_v16  ;;  %v1269_v19 = vrot.slane %v4082_v18, %v4076_v16 }
 0x2fe   :  { %2878 = vmatpush2.bf16.msra.mxu0 %v3590_v38  ;;  %2838 = vmatprep.subr.bf16.mxu1 %v3455_v20 }
 0x2ff   :  { %2879 = vmatprep.subr.bf16.mxu0 %v3583_v13 }
 0x301   :  { %2839 = vmatpush2.bf16.msra.mxu1 %v3454_v26 }
 0x302   :  { %2880 = vmatpush2.bf16.msra.mxu0 %v3582_v31  ;;  %2840 = vmatprep.subr.bf16.mxu1 %v3447_v14 }
 0x303   :  { %2881 = vmatprep.subr.bf16.mxu0 %v3575_v34 }
 0x305   :  { %2841 = vmatpush2.bf16.msra.mxu1 %v3446_v41 }
 0x306   :  { %2882 = vmatpush2.bf16.msra.mxu0 %v3574_v42  ;;  %2842 = vmatprep.subr.bf16.mxu1 %v3439_v43 }
 0x307   :  { %2883 = vmatprep.subr.bf16.mxu0 %v3567_v44 }
 0x309   :  { %2843 = vmatpush2.bf16.msra.mxu1 %v3438_v52 }
 0x30a   :  { %2884 = vmatpush2.bf16.msra.mxu0 %v3566_v53  ;;  %2844 = vmatprep.subr.bf16.mxu1 %v3431_v47 }
 0x30b   :  { %2885 = vmatprep.subr.bf16.mxu0 %v3559_v54 }
 0x30d   :  { %2845 = vmatpush2.bf16.msra.mxu1 %v3430_v1 }
 0x30e   :  { %2886 = vmatpush2.bf16.msra.mxu0 %v3558_v2  ;;  %2846 = vmatprep.subr.bf16.mxu1 %v3423_v4 }
 0x30f   :  { %2887 = vmatprep.subr.bf16.mxu0 %v3551_v5 }
 0x311   :  { %2847 = vmatpush2.bf16.msra.mxu1 %v3422_v63 }
 0x312   :  { %2888 = vmatpush2.bf16.msra.mxu0 %v3550_v0  ;;  %2848 = vmatprep.subr.bf16.mxu1 %v3415_v28 }
 0x313   :  { %2889 = vmatprep.subr.bf16.mxu0 %v3543_v30 }
 0x315   :  { %2849 = vmatpush2.bf16.msra.mxu1 %v3414_v9 }
 0x316   :  { %2890 = vmatpush2.bf16.msra.mxu0 %v3542_v10  ;;  %2850 = vmatprep.subr.bf16.mxu1 %v3407_v12  ;;  %v4089_v10 = vsub.s32 7, %v3951_v36  ;;  %v4091_v12 = vld [vmem:[#allocation9 + $0x40] sm:$0xff] }
 0x317   :  { %2891 = vmatprep.subr.bf16.mxu0 %v3535_v32 }
 0x319   :  { %2851 = vmatpush2.bf16.msra.mxu1 %v3406_v11  ;;  %v3081_v11 = vrot.slane %v4078_v15, %v4089_v10 }
 0x31a   :  { %2892 = vmatpush2.bf16.msra.mxu0 %v3534_v33 }
 0x31c   :  { %2853 = vmatmul.mubr.bf16.vlgmr.msra.gmra.mxu1 %v4051_v48  ;;  %v2608_v38 = vpop.f32.mrf.mxu1 }
 0x31d   :  { %2894 = vmatmul.mubr.bf16.vlgmr.msra.gmra.mxu0 %v4054_v49  ;;  %v2609_v20 = vadd.f32 %v2608_v38, %v1265_v17  ;;  %v2649_v13 = vpop.f32.mrf.mxu0  ;;  %v97_v38 = vld [vmem:[#allocation9 + $0x48] sm:$0xff] }
 0x31e   :  { %v2610_v21 = vpop.f32.mrf.mxu1 }
 0x31f   :  { %v2650_v24 = vadd.f32 %v2649_v13, %v2609_v20  ;;  %v2611_v25 = vadd.f32 %v2610_v21, %v1269_v19  ;;  %v2651_v3 = vpop.f32.mrf.mxu0  ;;  %v3121_v19 = vrot.slane %v4091_v12, %v3954_v37  ;;  %v3085_v13 = vrot.slane %v4082_v18, %v4089_v10 }
 0x320   :  { %v2612_v26 = vpop.f32.mrf.mxu1 }
 0x321   :  { %v2902_v31 = vrot.slane %v2650_v24, 4  ;;  %v2958_v14 = vmul.f32 %v2650_v24, %v2650_v24  ;;  %v2652_v34 = vadd.f32 %v2651_v3, %v2611_v25  ;;  %v2653_v35 = vpop.f32.mrf.mxu0  ;;  %v3125_v3 = vrot.slane %v97_v38, %v3954_v37 }
 0x322   :  { %v2613_v27 = vpop.f32.mrf.mxu1  ;;  %v3189_v35 = vrot.slane %v97_v38, %v3965_v22 }
 0x323   :  { %v2903_v40 = vadd.f32 %v2902_v31, %v2650_v24  ;;  %v2966_v39 = vrot.slane %v2958_v14, 4  ;;  %v2908_v41 = vrot.slane %v2652_v34, 4  ;;  %v2959_v42 = vmul.f32 %v2652_v34, %v2652_v34  ;;  %v2654_v48 = vpop.f32.mrf.mxu0 }
 0x325   :  { %v2904_v43 = vrot.slane %v2903_v40, 2  ;;  %v2967_v44 = vadd.f32 %v2966_v39, %v2958_v14  ;;  %v2909_v49 = vadd.f32 %v2908_v41, %v2652_v34  ;;  %v2972_v45 = vrot.slane %v2959_v42, 4 }
 0x326   :  { %v3185_v14 = vrot.slane %v4091_v12, %v3965_v22 }
 0x327   :  { %v2905_v46 = vadd.f32 %v2904_v43, %v2903_v40  ;;  %v2968_v50 = vrot.slane %v2967_v44, 2  ;;  %v2910_v51 = vrot.slane %v2909_v49, 2  ;;  %v2973_v52 = vadd.f32 %v2972_v45, %v2959_v42  ;;  %v4105_v42 = vld [vmem:[#allocation9 + $0x10] sm:$0xff]  ;;  %v4109_v43 = vld [vmem:[#allocation9 + $0x18] sm:$0xff] }
 0x328   :  { %v1273_v48 = vrot.slane %v4105_v42, %v4076_v16 }
 0x329   :  { %v2906_v53 = vrot.slane %v2905_v46, 1  ;;  %v2969_v47 = vadd.f32 %v2968_v50, %v2967_v44  ;;  %v2911_v54 = vadd.f32 %v2910_v51, %v2909_v49  ;;  %v2974_v55 = vrot.slane %v2973_v52, 2 }
 0x32a   :  { %v1277_v44 = vrot.slane %v4109_v43, %v4076_v16 }
 0x32b   :  { %v2907_v56 = vadd.f32 %v2906_v53, %v2905_v46  ;;  %v2970_v57 = vrot.slane %v2969_v47, 1  ;;  %v2912_v61 = vrot.slane %v2911_v54, 1  ;;  %v2975_v1 = vadd.f32 %v2974_v55, %v2973_v52 }
 0x32d   :  { %v2950_v2 = vmul.f32 0.125, %v2907_v56  ;;  %v2971_v4 = vadd.f32 %v2970_v57, %v2969_v47  ;;  %v2913_v5 = vadd.f32 %v2912_v61, %v2911_v54  ;;  %v2976_v58 = vrot.slane %v2975_v1, 1 }
 0x32f   :  { %v3014_v59 = vmul.f32 0.125, %v2971_v4  ;;  %v3022_v60 = vmul.f32 %v2950_v2, %v2950_v2  ;;  %v2951_v62 = vmul.f32 0.125, %v2913_v5  ;;  %v2977_v63 = vadd.f32 %v2976_v58, %v2975_v1 }
 0x330   :  { %v3046_v32 = vsub.f32 %v2650_v24, %v2950_v2 }
 0x331   :  { %v3030_v0 = vsub.f32 %v3014_v59, %v3022_v60  ;;  %v3023_v28 = vmul.f32 %v2951_v62, %v2951_v62  ;;  %v3015_v30 = vmul.f32 0.125, %v2977_v63  ;;  %v3047_v20 = vsub.f32 %v2652_v34, %v2951_v62 }
 0x333   :  { %v3038_v6 = vmax.f32 %v3030_v0, 0.0  ;;  %v3031_v29 = vsub.f32 %v3015_v30, %v3023_v28 }
 0x335   :  { %v3054_v7 = vadd.f32 1e-05, %v3038_v6  ;;  %v3039_v8 = vmax.f32 %v3031_v29, 0.0 }
 0x337   :  { %3751 = vrsqrt.f32 %v3054_v7  ;;  %v3055_v9 = vadd.f32 1e-05, %v3039_v8 }
 0x339   :  { %3753 = vrsqrt.f32 %v3055_v9 }
 0x344   :  { %v3752_v33 = vpop.eup %3751 }
 0x345   :  { %v3070_v17 = vmul.f32 %v3752_v33, %v3046_v32 }
 0x346   :  { %v3754_v21 = vpop.eup %3753 }
 0x347   :  { %v3110_v25 = vmul.f32 %v3081_v11, %v3070_v17  ;;  %v3071_v36 = vmul.f32 %v3754_v21, %v3047_v20 }
 0x349   :  { %v3150_v26 = vadd.f32 %v3121_v19, %v3110_v25  ;;  %v3111_v24 = vmul.f32 %v3085_v13, %v3071_v36 }
 0x34b   :  { %v3166_v31 = vmul.f32 0.2, %v3150_v26  ;;  %vm3158_vm7 = vcmp.ge.f32.partialorder %v3150_v26, 0.0  ;;  %v3151_v15 = vadd.f32 %v3125_v3, %v3111_v24 }
 0x34d   :  { %v3167_v27 = vmul.f32 0.2, %v3151_v15  ;;  %vm3159_vm8 = vcmp.ge.f32.partialorder %v3151_v15, 0.0  ;;  %v3174_v34 = vsel %vm3158_vm7, %v3150_v26, %v3166_v31 }
 0x34e   :  { %v3214_v18 = vmul.f32 %v3185_v14, %v3174_v34 }
 0x34f   :  { %v3175_v40 = vsel %vm3159_vm8, %v3151_v15, %v3167_v27 }
 0x350   :  { %v3215_v39 = vmul.f32 %v3189_v35, %v3175_v40  ;;  %v98_v40 = vld [vmem:[#allocation9 + $0x50] sm:$0xff] }
 0x352   :  { %v4103_v41 = vadd.f32 %v3215_v39, %v3214_v18  ;;  %v3089_v39 = vrot.slane %v4105_v42, %v4089_v10 }
 0x35c   :  { %v2690_v49 = vpop.f32.mrf.mxu1 }
 0x35d   :  { %v2691_v45 = vadd.f32 %v2690_v49, %v1273_v48  ;;  %v2731_v46 = vpop.f32.mrf.mxu0  ;;  %v3129_v49 = vrot.slane %v98_v40, %v3954_v37 }
 0x35e   :  { %v2692_v50 = vpop.f32.mrf.mxu1 }
 0x35f   :  { %v2732_v51 = vadd.f32 %v2731_v46, %v2691_v45  ;;  %v2693_v52 = vadd.f32 %v2692_v50, %v1277_v44  ;;  %v2733_v53 = vpop.f32.mrf.mxu0  ;;  %v99_v45 = vld [vmem:[#allocation9 + $0x58] sm:$0xff]  ;;  %v3093_v50 = vrot.slane %v4109_v43, %v4089_v10 }
 0x360   :  { %v2694_v47 = vpop.f32.mrf.mxu1 }
 0x361   :  { %v2914_v54 = vrot.slane %v2732_v51, 4  ;;  %v2960_v55 = vmul.f32 %v2732_v51, %v2732_v51  ;;  %v2734_v56 = vadd.f32 %v2733_v53, %v2693_v52  ;;  %v2735_v57 = vpop.f32.mrf.mxu0 }
 0x362   :  { %v2695_v61 = vpop.f32.mrf.mxu1 }
 0x363   :  { %v2915_v1 = vadd.f32 %v2914_v54, %v2732_v51  ;;  %v2978_v2 = vrot.slane %v2960_v55, 4  ;;  %v2920_v4 = vrot.slane %v2734_v56, 4  ;;  %v2961_v5 = vmul.f32 %v2734_v56, %v2734_v56  ;;  %v2736_v58 = vpop.f32.mrf.mxu0 }
 0x364   :  { %v3133_v54 = vrot.slane %v99_v45, %v3954_v37 }
 0x365   :  { %v2916_v59 = vrot.slane %v2915_v1, 2  ;;  %v2979_v60 = vadd.f32 %v2978_v2, %v2960_v55  ;;  %v2921_v62 = vadd.f32 %v2920_v4, %v2734_v56  ;;  %v2984_v63 = vrot.slane %v2961_v5, 4 }
 0x366   :  { %v3197_v2 = vrot.slane %v99_v45, %v3965_v22 }
 0x367   :  { %v2917_v0 = vadd.f32 %v2916_v59, %v2915_v1  ;;  %v2980_v28 = vrot.slane %v2979_v60, 2  ;;  %v2922_v30 = vrot.slane %v2921_v62, 2  ;;  %v2985_v6 = vadd.f32 %v2984_v63, %v2961_v5 }
 0x369   :  { %v2918_v29 = vrot.slane %v2917_v0, 1  ;;  %v2981_v7 = vadd.f32 %v2980_v28, %v2979_v60  ;;  %v2923_v8 = vadd.f32 %v2922_v30, %v2921_v62  ;;  %v2986_v9 = vrot.slane %v2985_v6, 2 }
 0x36b   :  { %v2919_v32 = vadd.f32 %v2918_v29, %v2917_v0  ;;  %v2982_v11 = vrot.slane %v2981_v7, 1  ;;  %v2924_v33 = vrot.slane %v2923_v8, 1  ;;  %v2987_v17 = vadd.f32 %v2986_v9, %v2985_v6  ;;  %v4128_v9 = vld [vmem:[#allocation9 + $0x28] sm:$0xff] }
 0x36d   :  { %v2952_v19 = vmul.f32 0.125, %v2919_v32  ;;  %v2983_v38 = vadd.f32 %v2982_v11, %v2981_v7  ;;  %v2925_v20 = vadd.f32 %v2924_v33, %v2923_v8  ;;  %v2988_v13 = vrot.slane %v2987_v17, 1  ;;  %v4124_v7 = vld [vmem:[#allocation9 + $0x20] sm:$0xff] }
 0x36e   :  { %v1281_v8 = vrot.slane %v4124_v7, %v4076_v16 }
 0x36f   :  { %v3016_v21 = vmul.f32 0.125, %v2983_v38  ;;  %v3024_v25 = vmul.f32 %v2952_v19, %v2952_v19  ;;  %v2953_v36 = vmul.f32 0.125, %v2925_v20  ;;  %v2989_v3 = vadd.f32 %v2988_v13, %v2987_v17 }
 0x370   :  { %v3048_v18 = vsub.f32 %v2732_v51, %v2952_v19  ;;  %v3193_v51 = vrot.slane %v98_v40, %v3965_v22 }
 0x371   :  { %v3032_v26 = vsub.f32 %v3016_v21, %v3024_v25  ;;  %v3025_v24 = vmul.f32 %v2953_v36, %v2953_v36  ;;  %v3017_v31 = vmul.f32 0.125, %v2989_v3  ;;  %v3049_v46 = vsub.f32 %v2734_v56, %v2953_v36 }
 0x373   :  { %v3040_v15 = vmax.f32 %v3032_v26, 0.0  ;;  %v3033_v14 = vsub.f32 %v3017_v31, %v3025_v24 }
 0x375   :  { %v3056_v35 = vadd.f32 1e-05, %v3040_v15  ;;  %v3041_v27 = vmax.f32 %v3033_v14, 0.0 }
 0x377   :  { %3755 = vrsqrt.f32 %v3056_v35  ;;  %v3057_v34 = vadd.f32 1e-05, %v3041_v27 }
 0x379   :  { %3757 = vrsqrt.f32 %v3057_v34 }
 0x384   :  { %v3756_v48 = vpop.eup %3755 }
 0x385   :  { %v3072_v44 = vmul.f32 %v3756_v48, %v3048_v18 }
 0x386   :  { %v3758_v52 = vpop.eup %3757 }
 0x387   :  { %v3112_v53 = vmul.f32 %v3089_v39, %v3072_v44  ;;  %v3073_v47 = vmul.f32 %v3758_v52, %v3049_v46 }
 0x389   :  { %v3152_v55 = vadd.f32 %v3129_v49, %v3112_v53  ;;  %v3113_v57 = vmul.f32 %v3093_v50, %v3073_v47 }
 0x38b   :  { %vm3160_vm9 = vcmp.ge.f32.partialorder %v3152_v55, 0.0  ;;  %v3168_v42 = vmul.f32 0.2, %v3152_v55  ;;  %v3153_v61 = vadd.f32 %v3133_v54, %v3113_v57 }
 0x38d   :  { %v3176_v1 = vsel %vm3160_vm9, %v3152_v55, %v3168_v42  ;;  %vm3161_vm10 = vcmp.ge.f32.partialorder %v3153_v61, 0.0  ;;  %v3169_v56 = vmul.f32 0.2, %v3153_v61 }
 0x38e   :  { %v3216_v4 = vmul.f32 %v3193_v51, %v3176_v1  ;;  %v4154_v1 = vld [vmem:[#allocation9 + $0x38] sm:$0xff] }
 0x38f   :  { %v3177_v5 = vsel %vm3161_vm10, %v3153_v61, %v3169_v56  ;;  %v4152_v61 = vld [vmem:[#allocation9 + $0x30] sm:$0xff] }
 0x390   :  { %v3223_v43 = vadd.f32 %v4103_v41, %v3216_v4  ;;  %v3217_v58 = vmul.f32 %v3197_v2, %v3177_v5  ;;  %v1285_v41 = vrot.slane %v4128_v9, %v4076_v16  ;;  %v1289_v2 = vrot.slane %v4152_v61, %v4076_v16 }
 0x391   :  { %v1293_v5 = vrot.slane %v4154_v1, %v4076_v16 }
 0x392   :  { %v4122_v59 = vadd.f32 %v3223_v43, %v3217_v58 }
 0x39c   :  { %v2772_v60 = vpop.f32.mrf.mxu1 }
 0x39d   :  { %v2813_v62 = vpop.f32.mrf.mxu0  ;;  %v2773_v32 = vadd.f32 %v2772_v60, %v1281_v8 }
 0x39e   :  { %v2774_v63 = vpop.f32.mrf.mxu1 }
 0x39f   :  { %v2815_v0 = vpop.f32.mrf.mxu0  ;;  %v4132_v11 = vadd.f32 %v2813_v62, %v2773_v32  ;;  %v2775_v33 = vadd.f32 %v2774_v63, %v1285_v41 }
 0x3a0   :  { %v2776_v28 = vpop.f32.mrf.mxu1 }
 0x3a1   :  { %v2817_v30 = vpop.f32.mrf.mxu0  ;;  %v2926_v17 = vrot.slane %v4132_v11, 4  ;;  %v2962_v19 = vmul.f32 %v4132_v11, %v4132_v11  ;;  %v4137_v38 = vadd.f32 %v2815_v0, %v2775_v33 }
 0x3a2   :  { %v2777_v6 = vpop.f32.mrf.mxu1 }
 0x3a3   :  { %v2818_v29 = vpop.f32.mrf.mxu0  ;;  %v2927_v20 = vadd.f32 %v2926_v17, %v4132_v11  ;;  %v2990_v13 = vrot.slane %v2962_v19, 4  ;;  %v2932_v21 = vrot.slane %v4137_v38, 4  ;;  %v2963_v25 = vmul.f32 %v4137_v38, %v4137_v38 }
 0x3a5   :  { %v2928_v36 = vrot.slane %v2927_v20, 2  ;;  %v2991_v3 = vadd.f32 %v2990_v13, %v2962_v19  ;;  %v2933_v26 = vadd.f32 %v2932_v21, %v4137_v38  ;;  %v2996_v24 = vrot.slane %v2963_v25, 4 }
 0x3a7   :  { %v2929_v31 = vadd.f32 %v2928_v36, %v2927_v20  ;;  %v2992_v15 = vrot.slane %v2991_v3, 2  ;;  %v2934_v14 = vrot.slane %v2933_v26, 2  ;;  %v2997_v35 = vadd.f32 %v2996_v24, %v2963_v25 }
 0x3a9   :  { %v2930_v27 = vrot.slane %v2929_v31, 1  ;;  %v2993_v34 = vadd.f32 %v2992_v15, %v2991_v3  ;;  %v2935_v40 = vadd.f32 %v2934_v14, %v2933_v26  ;;  %v2998_v18 = vrot.slane %v2997_v35, 2 }
 0x3ab   :  { %v2931_v39 = vadd.f32 %v2930_v27, %v2929_v31  ;;  %v2994_v48 = vrot.slane %v2993_v34, 1  ;;  %v2936_v44 = vrot.slane %v2935_v40, 1  ;;  %v2999_v49 = vadd.f32 %v2998_v18, %v2997_v35 }
 0x3ad   :  { %v4144_v45 = vmul.f32 0.125, %v2931_v39  ;;  %v2995_v46 = vadd.f32 %v2994_v48, %v2993_v34  ;;  %v2937_v50 = vadd.f32 %v2936_v44, %v2935_v40  ;;  %v3000_v52 = vrot.slane %v2999_v49, 1 }
 0x3af   :  { %v3018_v53 = vmul.f32 0.125, %v2995_v46  ;;  %v3026_v47 = vmul.f32 %v4144_v45, %v4144_v45  ;;  %v4148_v54 = vmul.f32 0.125, %v2937_v50  ;;  %v3001_v55 = vadd.f32 %v3000_v52, %v2999_v49 }
 0x3b1   :  { %v3034_v57 = vsub.f32 %v3018_v53, %v3026_v47  ;;  %v3019_v51 = vmul.f32 0.125, %v3001_v55  ;;  %v3027_v42 = vmul.f32 %v4148_v54, %v4148_v54 }
 0x3b3   :  { %v3042_v56 = vmax.f32 %v3034_v57, 0.0  ;;  %v3035_v4 = vsub.f32 %v3019_v51, %v3027_v42 }
 0x3b5   :  { %v3058_v62 = vadd.f32 1e-05, %v3042_v56  ;;  %v3043_v63 = vmax.f32 %v3035_v4, 0.0 }
 0x3b7   :  { %3759 = vrsqrt.f32 %v3058_v62  ;;  %v3059_v16 = vadd.f32 1e-05, %v3043_v63 }
 0x3b9   :  { %3761 = vrsqrt.f32 %v3059_v16  ;;  %v101_v16 = vld [vmem:[#allocation9 + $0x68] sm:$0xff] }
 0x3c4   :  { %v3760_v47 = vpop.eup %3759 }
 0x3dc   :  { %v2854_v43 = vpop.f32.mrf.mxu1 }
 0x3dd   :  { %v2855_v58 = vadd.f32 %v2854_v43, %v1289_v2  ;;  %v2895_v60 = vpop.f32.mrf.mxu0  ;;  %v3050_v2 = vsub.f32 %v4132_v11, %v4144_v45  ;;  %v3762_v43 = vpop.eup %3761 }
 0x3de   :  { %v2856_v0 = vpop.f32.mrf.mxu1 }
 0x3df   :  { %v4160_v28 = vadd.f32 %v2895_v60, %v2855_v58  ;;  %v2857_v30 = vadd.f32 %v2856_v0, %v1293_v5  ;;  %v2897_v6 = vpop.f32.mrf.mxu0  ;;  %v3097_v58 = vrot.slane %v4124_v7, %v4089_v10  ;;  %v3074_v60 = vmul.f32 %v3760_v47, %v3050_v2  ;;  %v100_v0 = vld [vmem:[#allocation9 + $0x60] sm:$0xff] }
 0x3e0   :  { %v2858_v29 = vpop.f32.mrf.mxu1 }
 0x3e1   :  { %v2938_v8 = vrot.slane %v4160_v28, 4  ;;  %v2964_v32 = vmul.f32 %v4160_v28, %v4160_v28  ;;  %v4165_v41 = vadd.f32 %v2897_v6, %v2857_v30  ;;  %v2899_v33 = vpop.f32.mrf.mxu0  ;;  %v3051_v30 = vsub.f32 %v4137_v38, %v4148_v54  ;;  %v102_v38 = vld [vmem:[#allocation9 + $0x70] sm:$0xff] }
 0x3e2   :  { %v2859_v17 = vpop.f32.mrf.mxu1  ;;  %v3101_v29 = vrot.slane %v4128_v9, %v4089_v10  ;;  %v3114_v11 = vmul.f32 %v3097_v58, %v3074_v60  ;;  %v3201_v54 = vrot.slane %v100_v0, %v3965_v22  ;;  %v3105_v9 = vrot.slane %v4152_v61, %v4089_v10 }
 0x3e3   :  { %v2939_v19 = vadd.f32 %v2938_v8, %v4160_v28  ;;  %v3002_v20 = vrot.slane %v2964_v32, 4  ;;  %v2944_v13 = vrot.slane %v4165_v41, 4  ;;  %v2965_v21 = vmul.f32 %v4165_v41, %v4165_v41  ;;  %v2900_v25 = vpop.f32.mrf.mxu0 }
 0x3e4   :  { %v3075_v45 = vmul.f32 %v3762_v43, %v3051_v30  ;;  %v3141_v17 = vrot.slane %v101_v16, %v3954_v37 }
 0x3e5   :  { %v2940_v36 = vrot.slane %v2939_v19, 2  ;;  %v3003_v3 = vadd.f32 %v3002_v20, %v2964_v32  ;;  %v2945_v26 = vadd.f32 %v2944_v13, %v4165_v41  ;;  %v3008_v24 = vrot.slane %v2965_v21, 4 }
 0x3e6   :  { %v3137_v32 = vrot.slane %v100_v0, %v3954_v37  ;;  %v3115_v7 = vmul.f32 %v3101_v29, %v3075_v45 }
 0x3e7   :  { %v2941_v31 = vadd.f32 %v2940_v36, %v2939_v19  ;;  %v3004_v15 = vrot.slane %v3003_v3, 2  ;;  %v2946_v14 = vrot.slane %v2945_v26, 2  ;;  %v3009_v35 = vadd.f32 %v3008_v24, %v2965_v21  ;;  %v103_v24 = vld [vmem:[#allocation9 + $0x78] sm:$0xff] }
 0x3e8   :  { %v3154_v19 = vadd.f32 %v3137_v32, %v3114_v11  ;;  %v3155_v20 = vadd.f32 %v3141_v17, %v3115_v7 }
 0x3e9   :  { %v2942_v27 = vrot.slane %v2941_v31, 1  ;;  %v3005_v34 = vadd.f32 %v3004_v15, %v3003_v3  ;;  %v2947_v40 = vadd.f32 %v2946_v14, %v2945_v26  ;;  %v3010_v18 = vrot.slane %v3009_v35, 2 }
 0x3ea   :  { %v3170_v13 = vmul.f32 0.2, %v3154_v19  ;;  %vm3162_vm11 = vcmp.ge.f32.partialorder %v3154_v19, 0.0  ;;  %v3171_v25 = vmul.f32 0.2, %v3155_v20  ;;  %vm3163_vm12 = vcmp.ge.f32.partialorder %v3155_v20, 0.0 }
 0x3eb   :  { %v2943_v39 = vadd.f32 %v2942_v27, %v2941_v31  ;;  %v3006_v48 = vrot.slane %v3005_v34, 1  ;;  %v2948_v44 = vrot.slane %v2947_v40, 1  ;;  %v3011_v49 = vadd.f32 %v3010_v18, %v3009_v35 }
 0x3ec   :  { %v3178_v36 = vsel %vm3162_vm11, %v3154_v19, %v3170_v13  ;;  %v3145_v31 = vrot.slane %v102_v38, %v3954_v37  ;;  %v3109_v15 = vrot.slane %v4154_v1, %v4089_v10  ;;  %v3205_v35 = vrot.slane %v101_v16, %v3965_v22 }
 0x3ed   :  { %v2956_v46 = vmul.f32 0.125, %v2943_v39  ;;  %v3007_v50 = vadd.f32 %v3006_v48, %v3005_v34  ;;  %v2949_v52 = vadd.f32 %v2948_v44, %v2947_v40  ;;  %v3012_v53 = vrot.slane %v3011_v49, 1 }
 0x3ee   :  { %v3218_v27 = vmul.f32 %v3201_v54, %v3178_v36  ;;  %v3179_v40 = vsel %vm3163_vm12, %v3155_v20, %v3171_v25  ;;  %v3149_v18 = vrot.slane %v103_v24, %v3954_v37  ;;  %v3209_v44 = vrot.slane %v102_v38, %v3965_v22 }
 0x3ef   :  { %v3020_v55 = vmul.f32 0.125, %v3007_v50  ;;  %v3028_v57 = vmul.f32 %v2956_v46, %v2956_v46  ;;  %v2957_v51 = vmul.f32 0.125, %v2949_v52  ;;  %v3013_v42 = vadd.f32 %v3012_v53, %v3011_v49 }
 0x3f0   :  { %v3052_v21 = vsub.f32 %v4160_v28, %v2956_v46  ;;  %v3219_v49 = vmul.f32 %v3205_v35, %v3179_v40  ;;  %v3225_v46 = vadd.f32 %v4122_v59, %v3218_v27  ;;  %v3213_v50 = vrot.slane %v103_v24, %v3965_v22 }
 0x3f1   :  { %v3036_v56 = vsub.f32 %v3020_v55, %v3028_v57  ;;  %v3029_v4 = vmul.f32 %v2957_v51, %v2957_v51  ;;  %v3021_v5 = vmul.f32 0.125, %v3013_v42  ;;  %v3053_v14 = vsub.f32 %v4165_v41, %v2957_v51 }
 0x3f2   :  { %v3226_v47 = vadd.f32 %v3225_v46, %v3219_v49  ;;  %v3234_v42 = vrot.slane %v4091_v12, %v3968_v23 }
 0x3f3   :  { %v3044_v62 = vmax.f32 %v3036_v56, 0.0  ;;  %v3037_v63 = vsub.f32 %v3021_v5, %v3029_v4 }
 0x3f5   :  { %v3060_v6 = vadd.f32 1e-05, %v3044_v62  ;;  %v3045_v8 = vmax.f32 %v3037_v63, 0.0 }
 0x3f7   :  { %3763 = vrsqrt.f32 %v3060_v6  ;;  %v3061_v33 = vadd.f32 1e-05, %v3045_v8 }
 0x3f9   :  { %3765 = vrsqrt.f32 %v3061_v33 }
 0x404   :  { %v3764_v3 = vpop.eup %3763 }
 0x405   :  { %v3076_v26 = vmul.f32 %v3764_v3, %v3052_v21 }
 0x406   :  { %v3766_v34 = vpop.eup %3765 }
 0x407   :  { %v3116_v61 = vmul.f32 %v3105_v9, %v3076_v26  ;;  %v3077_v28 = vmul.f32 %v3766_v34, %v3053_v14 }
 0x409   :  { %v3156_v39 = vadd.f32 %v3145_v31, %v3116_v61  ;;  %v3117_v48 = vmul.f32 %v3109_v15, %v3077_v28 }
 0x40b   :  { %vm3164_vm13 = vcmp.ge.f32.partialorder %v3156_v39, 0.0  ;;  %v3172_v10 = vmul.f32 0.2, %v3156_v39  ;;  %v3157_v1 = vadd.f32 %v3149_v18, %v3117_v48 }
 0x40d   :  { %v3180_v41 = vsel %vm3164_vm13, %v3156_v39, %v3172_v10  ;;  %vm3165_vm14 = vcmp.ge.f32.partialorder %v3157_v1, 0.0  ;;  %v3173_v52 = vmul.f32 0.2, %v3157_v1 }
 0x40e   :  { %v3220_v53 = vmul.f32 %v3209_v44, %v3180_v41 }
 0x40f   :  { %v3181_v55 = vsel %vm3165_vm14, %v3157_v1, %v3173_v52 }
 0x410   :  { %v3227_v57 = vadd.f32 %v3226_v47, %v3220_v53  ;;  %v3221_v37 = vmul.f32 %v3213_v50, %v3181_v55 }
 0x412   :  { %v3228_v51 = vadd.f32 %v3227_v57, %v3221_v37 }
 0x414   :  { %3229 = vadd.xlane.f32.xlu0 %v3228_v51 }
 0x49d   :  { %v3230_v2 = vpop.xlane.xlu0 %3229 }
 0x49e   :  { %v3235_v59 = vadd.f32 %v3234_v42, %v3230_v2 }
 0x4a0   :  { %3237 = vst.msk [vmem:[%s4205_s5] sm:$0xff] %vm3236_vm15, %v3235_v59 }
 0x4a1   :  { %3242 = vsyncpa [#allocation3], 1 }
 0x4a2   :  { %3243 = vsyncpa [#allocation5], 1 }
 0x4a3   :  { %3244 = vsyncpa [#allocation8], 1 }

</bundles_post_ra>
